<compile_context>
chip_gen: v7x
topology: tpu7x:2x2x1
jax: 0.10.0
libtpu: 0.0.40
codegen_flags: <defaults>
</compile_context>

<pallas_src>
import functools

import jax
import jax.numpy as jnp
import numpy as np
from jax.experimental import pallas as pl
from jax.experimental.pallas import tpu as pltpu

N_BINS = 15
LANE = 128            # bins live on the lane axis (padded to 128)
_MAX_TILE_N = 16384   # sanity cap on rows per grid step


# ----------------------------------------------------------------------------
# Generation-aware sizing
# ----------------------------------------------------------------------------
def _tpu_generation_params():
    kind = ""
    try:
        kind = jax.devices()[0].device_kind.lower()
    except Exception:
        pass
    if "v7" in kind:
        # v7x: 64 MiB physical VMEM per TC, 2 TensorCores per chip.
        return dict(num_splits=2, tile_budget=16 << 20, vmem_limit=44 << 20)
    if ("v5" in kind) or ("v6" in kind):
        # v5e/v5p/v6e: 128 MiB physical VMEM, 1 TensorCore.
        return dict(num_splits=1, tile_budget=36 << 20, vmem_limit=96 << 20)
    # Unknown / older generations (v2/v3/v4, interpret): conservative defaults.
    return dict(num_splits=1, tile_budget=10 << 20, vmem_limit=32 << 20)


def _per_row_vmem_bytes(c, itemsize):
    """Approximate VMEM bytes touched per sample row inside one grid step."""
    c_pad = max(LANE, ((c + LANE - 1) // LANE) * LANE)
    wire = 2 * c_pad * itemsize     # double-buffered pipelined logits (wire dtype)
    f32_tmp = 2 * c_pad * 4         # in-kernel f32 cast + exp()/where temporaries
    labels = 2 * LANE * 4           # (tn,1) i32 block lane-pads to 128, double-buffered
    onehot = LANE * 4               # (tn,128) f32 bin one-hot
    misc = 3 * LANE * 4             # w / conf / pred / masks (lane-padded columns)
    return wire + f32_tmp + labels + onehot + misc


def _auto_tile_n(n, c, itemsize, tile_budget, num_splits):
    """Pick a large, VMEM-safe row tile (multiple of 8)."""
    per_row = _per_row_vmem_bytes(c, itemsize)
    tile = tile_budget // per_row
    tile = min(tile, _MAX_TILE_N)
    rows_per_split = -(-n // max(num_splits, 1))
    tile = min(tile, ((rows_per_split + 7) // 8) * 8)   # don't exceed each core's share
    tile = max(8, (tile // 8) * 8)
    return int(tile)


# ----------------------------------------------------------------------------
# Kernel
# ----------------------------------------------------------------------------
def _tile_update(logits, labels, valid):
    """Histogram update for one row tile.

    logits: (tn, C) f32 (invalid rows already zeroed), labels: (tn, 1) i32,
    valid: (tn, 1) f32 row mask, or None when every row is valid.
    Returns (8, LANE) f32: rows 0..2 = [bin counts, sum conf, sum acc].
    """
    tn = logits.shape[0]

    # --- max-softmax confidence and argmax prediction ---
    m = jnp.max(logits, axis=1, keepdims=True)                  # (tn, 1)
    denom = jnp.sum(jnp.exp(logits - m), axis=1, keepdims=True)
    conf = 1.0 / denom                                          # exact max softmax prob

    iota_c = jax.lax.broadcasted_iota(jnp.int32, logits.shape, 1)
    big = jnp.int32(jnp.iinfo(jnp.int32).max)
    pred = jnp.min(jnp.where(logits == m, iota_c, big), axis=1, keepdims=True)
    acc = (pred == labels).astype(jnp.float32)                  # (tn, 1)

    # --- bin one-hot via a single equality: conf in (k/B, (k+1)/B] -> bin k ---
    bin_idx = jnp.clip(jnp.ceil(conf * N_BINS).astype(jnp.int32) - 1,
                       0, N_BINS - 1)                           # (tn, 1)
    lane = jax.lax.broadcasted_iota(jnp.int32, (tn, LANE), 1)
    in_bin = (lane == bin_idx).astype(jnp.float32)              # (tn, LANE)

    # --- pack [count, conf, acc] weights; accumulate with one MXU matmul ---
    col = jax.lax.broadcasted_iota(jnp.int32, (tn, 8), 1)
    if valid is None:
        w = jnp.where(col == 0, 1.0,
            jnp.where(col == 1, conf,
            jnp.where(col == 2, acc, 0.0)))                     # (tn, 8)
    else:
        w = jnp.where(col == 0, valid,
            jnp.where(col == 1, conf * valid,
            jnp.where(col == 2, acc * valid, 0.0)))             # (tn, 8)

    # w.T @ in_bin -> (8, LANE)
    return pl.dot(w, in_bin, trans_a=True)


def _ece_kernel(n_ref, logits_ref, labels_ref, hist_ref):
    s = pl.program_id(0)                       # split (TensorCore) index
    i = pl.program_id(1)                       # step within the split
    gi = s * pl.num_programs(1) + i            # UNCLAMPED global block index

    @pl.when(i == 0)
    def _():
        hist_ref[...] = jnp.zeros_like(hist_ref)

    tn = logits_ref.shape[0]
    n = n_ref[0]

    # Only blocks that overrun N (ragged tail / duplicate clamped blocks from
    # the core split) need the per-row mask; full blocks skip the (tn, C) select.
    full = (gi + 1) * tn <= n

    @pl.when(full)
    def _():
        logits = logits_ref[...].astype(jnp.float32)
        hist_ref[...] += _tile_update(logits, labels_ref[...], None)[None]

    @pl.when(jnp.logical_not(full))
    def _():
        row = gi * tn + jax.lax.broadcasted_iota(jnp.int32, (tn, 1), 0)
        valid_b = row < n                                       # (tn, 1) bool
        # Zero garbage rows BEFORE exp so NaN/inf can't leak into accumulators.
        logits = jnp.where(valid_b, logits_ref[...].astype(jnp.float32), 0.0)
        hist_ref[...] += _tile_update(
            logits, labels_ref[...], valid_b.astype(jnp.float32))[None]


# ----------------------------------------------------------------------------
# Wrapper
# ----------------------------------------------------------------------------
@functools.partial(jax.jit, static_argnames=("tile_n", "num_splits"))
def ece_loss(logits, labels, tile_n=None, num_splits=None):
    """logits: (N, C) float, labels: (N,) int -> ECE scalar (f32)."""
    n, c = logits.shape
    params = _tpu_generation_params()

    if num_splits is None:
        num_splits = params["num_splits"]
    num_splits = max(1, int(num_splits))

    if tile_n is None:
        tile_n = _auto_tile_n(n, c, jnp.dtype(logits.dtype).itemsize,
                              params["tile_budget"], num_splits)
    else:
        tile_n = max(8, (int(tile_n) // 8) * 8)

    total_steps = pl.cdiv(n, tile_n)
    num_splits = max(1, min(num_splits, total_steps))
    steps_per_split = pl.cdiv(total_steps, num_splits)

    labels_2d = labels.astype(jnp.int32).reshape(n, 1)
    n_valid = jnp.array([n], dtype=jnp.int32)

    def block_map(s, i, nref):
        # Clamp so fully-OOB duplicate blocks re-read the last real block
        # (their rows are masked out in-kernel via the unclamped index).
        return (jnp.minimum(s * steps_per_split + i, total_steps - 1), 0)

    hist = pl.pallas_call(
        _ece_kernel,
        out_shape=jax.ShapeDtypeStruct((num_splits, 8, LANE), jnp.float32),
        grid_spec=pltpu.PrefetchScalarGridSpec(
            num_scalar_prefetch=1,
            grid=(num_splits, steps_per_split),
            in_specs=[
                pl.BlockSpec((tile_n, c), block_map),
                pl.BlockSpec((tile_n, 1), block_map),
            ],
            out_specs=pl.BlockSpec((1, 8, LANE), lambda s, i, nref: (s, 0, 0)),
        ),
        compiler_params=pltpu.CompilerParams(
            dimension_semantics=("parallel", "arbitrary"),
            vmem_limit_bytes=params["vmem_limit"],
        ),
    )(n_valid, logits, labels_2d)

    # --- finalize (tiny) in the wrapper: combine per-core partial histograms ---
    h = jnp.sum(hist, axis=0)                         # (8, LANE)
    cnt = h[0, :N_BINS]
    conf_sum = h[1, :N_BINS]
    acc_sum = h[2, :N_BINS]
    safe = jnp.maximum(cnt, 1.0)
    gap = jnp.abs(conf_sum / safe - acc_sum / safe)
    ece = jnp.sum(jnp.where(cnt > 0.0, gap * (cnt / jnp.float32(n)), 0.0))
    return ece


def ece_reference(logits, labels):
    """Pure-JAX reference mirroring the PyTorch _ECELoss forward."""
    sm = jax.nn.softmax(logits.astype(jnp.float32), axis=1)
    conf = jnp.max(sm, axis=1)
    pred = jnp.argmax(sm, axis=1)
    acc = (pred == labels).astype(jnp.float32)
    bounds = jnp.linspace(0.0, 1.0, N_BINS + 1)
    ece = 0.0
    n = logits.shape[0]
    for k in range(N_BINS):
        in_bin = (conf > bounds[k]) & (conf <= bounds[k + 1])
        cnt = jnp.sum(in_bin.astype(jnp.float32))
        prop = cnt / n
        acc_in = jnp.where(cnt > 0, jnp.sum(acc * in_bin) / jnp.maximum(cnt, 1.0), 0.0)
        conf_in = jnp.where(cnt > 0, jnp.sum(conf * in_bin) / jnp.maximum(cnt, 1.0), 0.0)
        ece = ece + jnp.where(cnt > 0, jnp.abs(conf_in - acc_in) * prop, 0.0)
    return ece


if __name__ == "__main__":
    key = jax.random.PRNGKey(0)
    k1, k2 = jax.random.split(key)
    N, C = 100, 10                    # small; forced-tile runs exercise ragged tails
    logits = jax.random.normal(k1, (N, C), dtype=jnp.float32) * 3.0
    labels = jax.random.randint(k2, (N,), 0, C, dtype=jnp.int32)

    out = ece_loss(logits, labels)                                 # auto tile / auto split
    out_split = ece_loss(logits, labels, tile_n=32, num_splits=2)  # multi-step + split + tail
    out_ragged = ece_loss(logits, labels, tile_n=8, num_splits=3)  # fully-masked duplicate blocks
    jax.block_until_ready((out, out_split, out_ragged))

    ref = ece_reference(logits, labels)
    for got in (out, out_split, out_ragged):
        np.testing.assert_allclose(np.asarray(got), np.asarray(ref),
                                   rtol=1e-5, atol=1e-6)
    print("KERNEL_OK")
</pallas_src>

<mosaic_0001>
module attributes {stable_mosaic.version = 11 : i64} {
  func.func @_ece_kernel(%arg0: i32, %arg1: i32, %arg2: memref<1xi32, #tpu.memory_space<smem>>, %arg3: memref<104x10xf32, #tpu.memory_space<vmem>>, %arg4: memref<104x1xi32, #tpu.memory_space<vmem>>, %arg5: memref<1x8x128xf32, #tpu.memory_space<vmem>>) attributes {dimension_semantics = [#tpu.dimension_semantics<parallel>, #tpu.dimension_semantics<arbitrary>], iteration_bounds = array<i64: 1, 1>, scalar_prefetch = 1 : i64, scratch_operands = 0 : i64, tpu.core_type = #tpu.core_type<tc>, window_params = [{transform_indices = @transform_0, window_bounds = array<i64: 104, 10>}, {transform_indices = @transform_1, window_bounds = array<i64: 104, 1>}, {transform_indices = @transform_2, window_bounds = array<i64: 1, 8, 128>}]} {
    %c1_i32 = arith.constant 1 : i32
    %0 = arith.muli %arg0, %c1_i32 : i32
    %1 = arith.addi %0, %arg1 : i32
    %c0_i32 = arith.constant 0 : i32
    %2 = arith.cmpi eq, %arg1, %c0_i32 : i32
    %3 = arith.extui %2 : i1 to i32
    %c0_i32_0 = arith.constant 0 : i32
    %4 = arith.cmpi ne, %3, %c0_i32_0 : i32
    scf.if %4 {
      %cst = arith.constant 0.000000e+00 : f32
      %14 = vector.broadcast %cst : f32 to vector<1x8x128xf32>
      %c0_4 = arith.constant 0 : index
      %c0_5 = arith.constant 0 : index
      %c0_6 = arith.constant 0 : index
      %15 = vector.load %arg5[%c0_4, %c0_5, %c0_6] : memref<1x8x128xf32, #tpu.memory_space<vmem>>, vector<1x8x128xf32>
      tpu.vector_store %arg5[%c0_4, %c0_5, %c0_6], %14 {strides = array<i32>} : memref<1x8x128xf32, #tpu.memory_space<vmem>>, vector<1x8x128xf32>,
    } else {
    }
    %c0 = arith.constant 0 : index
    %5 = memref.load %arg2[%c0] : memref<1xi32, #tpu.memory_space<smem>>
    %c1_i32_1 = arith.constant 1 : i32
    %6 = arith.addi %1, %c1_i32_1 : i32
    %c104_i32 = arith.constant 104 : i32
    %7 = arith.muli %6, %c104_i32 : i32
    %8 = arith.cmpi sle, %7, %5 : i32
    %9 = arith.extui %8 : i1 to i32
    %c0_i32_2 = arith.constant 0 : i32
    %10 = arith.cmpi ne, %9, %c0_i32_2 : i32
    scf.if %10 {
      %c0_4 = arith.constant 0 : index
      %c0_5 = arith.constant 0 : index
      %14 = vector.load %arg3[%c0_4, %c0_5] : memref<104x10xf32, #tpu.memory_space<vmem>>, vector<104x10xf32>
      %c0_6 = arith.constant 0 : index
      %c0_7 = arith.constant 0 : index
      %c0_8 = arith.constant 0 : index
      %15 = vector.load %arg5[%c0_6, %c0_7, %c0_8] : memref<1x8x128xf32, #tpu.memory_space<vmem>>, vector<1x8x128xf32>
      %c0_9 = arith.constant 0 : index
      %c0_10 = arith.constant 0 : index
      %16 = vector.load %arg4[%c0_9, %c0_10] : memref<104x1xi32, #tpu.memory_space<vmem>>, vector<104x1xi32>
      %cst = arith.constant dense<0xFF800000> : vector<104xf32>
      %17 = vector.multi_reduction <maximumf>, %14, %cst [1] : vector<104x10xf32> to vector<104xf32>
      %18 = vector.shape_cast %17 : vector<104xf32> to vector<104x1xf32>
      %19 = vector.broadcast %18 : vector<104x1xf32> to vector<104x10xf32>
      %20 = arith.subf %14, %19 : vector<104x10xf32>
      %21 = math.exp %20 : vector<104x10xf32>
      %cst_11 = arith.constant dense<0.000000e+00> : vector<104xf32>
      %22 = vector.multi_reduction <add>, %21, %cst_11 [1] : vector<104x10xf32> to vector<104xf32>
      %23 = vector.shape_cast %22 : vector<104xf32> to vector<104x1xf32>
      %cst_12 = arith.constant 1.000000e+00 : f32
      %24 = vector.broadcast %cst_12 : f32 to vector<104x1xf32>
      %25 = arith.divf %24, %23 : vector<104x1xf32>
      %26 = tpu.iota {dimensions = array<i32: 1>} : vector<104x10xi32>
      %27 = vector.broadcast %18 : vector<104x1xf32> to vector<104x10xf32>
      %28 = arith.cmpf oeq, %14, %27 : vector<104x10xf32>
      %c2147483647_i32 = arith.constant 2147483647 : i32
      %29 = vector.broadcast %c2147483647_i32 : i32 to vector<104x10xi32>
      %30 = arith.select %28, %26, %29 : vector<104x10xi1>, vector<104x10xi32>
      %cst_13 = arith.constant dense<2147483647> : vector<104xi32>
      %31 = vector.multi_reduction <minsi>, %30, %cst_13 [1] : vector<104x10xi32> to vector<104xi32>
      %32 = vector.shape_cast %31 : vector<104xi32> to vector<104x1xi32>
      %33 = arith.cmpi eq, %32, %16 : vector<104x1xi32>
      %34 = arith.extui %33 : vector<104x1xi1> to vector<104x1xi32>
      %35 = arith.sitofp %34 : vector<104x1xi32> to vector<104x1xf32>
      %cst_14 = arith.constant 1.500000e+01 : f32
      %36 = vector.broadcast %cst_14 : f32 to vector<104x1xf32>
      %37 = arith.mulf %25, %36 : vector<104x1xf32>
      %38 = math.ceil %37 : vector<104x1xf32>
      %39 = arith.fptosi %38 : vector<104x1xf32> to vector<104x1xi32>
      %c1_i32_15 = arith.constant 1 : i32
      %40 = vector.broadcast %c1_i32_15 : i32 to vector<104x1xi32>
      %41 = arith.subi %39, %40 : vector<104x1xi32>
      %c0_i32_16 = arith.constant 0 : i32
      %c14_i32 = arith.constant 14 : i32
      %42 = vector.broadcast %c0_i32_16 : i32 to vector<104x1xi32>
      %43 = arith.maxsi %42, %41 : vector<104x1xi32>
      %44 = vector.broadcast %c14_i32 : i32 to vector<104x1xi32>
      %45 = arith.minsi %44, %43 : vector<104x1xi32>
      %46 = tpu.iota {dimensions = array<i32: 1>} : vector<104x128xi32>
      %47 = vector.broadcast %45 : vector<104x1xi32> to vector<104x128xi32>
      %48 = arith.cmpi eq, %46, %47 : vector<104x128xi32>
      %49 = arith.extui %48 : vector<104x128xi1> to vector<104x128xi32>
      %50 = arith.sitofp %49 : vector<104x128xi32> to vector<104x128xf32>
      %51 = tpu.iota {dimensions = array<i32: 1>} : vector<104x8xi32>
      %c0_i32_17 = arith.constant 0 : i32
      %52 = vector.broadcast %c0_i32_17 : i32 to vector<104x8xi32>
      %53 = arith.cmpi eq, %51, %52 : vector<104x8xi32>
      %c1_i32_18 = arith.constant 1 : i32
      %54 = vector.broadcast %c1_i32_18 : i32 to vector<104x8xi32>
      %55 = arith.cmpi eq, %51, %54 : vector<104x8xi32>
      %c2_i32 = arith.constant 2 : i32
      %56 = vector.broadcast %c2_i32 : i32 to vector<104x8xi32>
      %57 = arith.cmpi eq, %51, %56 : vector<104x8xi32>
      %cst_19 = arith.constant 0.000000e+00 : f32
      %58 = vector.shape_cast %35 : vector<104x1xf32> to vector<104x1xf32>
      %59 = vector.broadcast %58 : vector<104x1xf32> to vector<104x8xf32>
      %60 = vector.broadcast %cst_19 : f32 to vector<104x8xf32>
      %61 = arith.select %57, %59, %60 : vector<104x8xi1>, vector<104x8xf32>
      %62 = vector.shape_cast %25 : vector<104x1xf32> to vector<104x1xf32>
      %63 = vector.broadcast %62 : vector<104x1xf32> to vector<104x8xf32>
      %64 = arith.select %55, %63, %61 : vector<104x8xi1>, vector<104x8xf32>
      %cst_20 = arith.constant 1.000000e+00 : f32
      %65 = vector.broadcast %cst_20 : f32 to vector<104x8xf32>
      %66 = arith.select %53, %65, %64 : vector<104x8xi1>, vector<104x8xf32>
      %cst_21 = arith.constant dense<0.000000e+00> : vector<8x128xf32>
      %67 = tpu.matmul %66, %50, %cst_21 {dimension_numbers = #tpu.dot_dimension_numbers<[0], [0], [1], [1], [0, 1, 1, 1], [], []>} : vector<104x8xf32>, vector<104x128xf32>, vector<8x128xf32> -> vector<8x128xf32>
      %68 = vector.shape_cast %67 : vector<8x128xf32> to vector<1x8x128xf32>
      %69 = arith.addf %15, %68 : vector<1x8x128xf32>
      %c0_22 = arith.constant 0 : index
      %c0_23 = arith.constant 0 : index
      %c0_24 = arith.constant 0 : index
      %70 = vector.load %arg5[%c0_22, %c0_23, %c0_24] : memref<1x8x128xf32, #tpu.memory_space<vmem>>, vector<1x8x128xf32>
      tpu.vector_store %arg5[%c0_22, %c0_23, %c0_24], %69 {strides = array<i32>} : memref<1x8x128xf32, #tpu.memory_space<vmem>>, vector<1x8x128xf32>,
    } else {
    }
    %true = arith.constant true
    %11 = arith.xori %8, %true : i1
    %12 = arith.extui %11 : i1 to i32
    %c0_i32_3 = arith.constant 0 : i32
    %13 = arith.cmpi ne, %12, %c0_i32_3 : i32
    scf.if %13 {
      %c104_i32_4 = arith.constant 104 : i32
      %14 = arith.muli %1, %c104_i32_4 : i32
      %15 = tpu.iota {dimensions = array<i32: 0>} : vector<104x1xi32>
      %16 = vector.broadcast %14 : i32 to vector<104x1xi32>
      %17 = arith.addi %16, %15 : vector<104x1xi32>
      %18 = vector.broadcast %5 : i32 to vector<104x1xi32>
      %19 = arith.cmpi slt, %17, %18 : vector<104x1xi32>
      %c0_5 = arith.constant 0 : index
      %c0_6 = arith.constant 0 : index
      %20 = vector.load %arg3[%c0_5, %c0_6] : memref<104x10xf32, #tpu.memory_space<vmem>>, vector<104x10xf32>
      %cst = arith.constant 0.000000e+00 : f32
      %21 = vector.shape_cast %19 : vector<104x1xi1> to vector<104x1xi1>
      %22 = vector.broadcast %21 : vector<104x1xi1> to vector<104x10xi1>
      %23 = vector.broadcast %cst : f32 to vector<104x10xf32>
      %24 = arith.select %22, %20, %23 : vector<104x10xi1>, vector<104x10xf32>
      %c0_7 = arith.constant 0 : index
      %c0_8 = arith.constant 0 : index
      %c0_9 = arith.constant 0 : index
      %25 = vector.load %arg5[%c0_7, %c0_8, %c0_9] : memref<1x8x128xf32, #tpu.memory_space<vmem>>, vector<1x8x128xf32>
      %c0_10 = arith.constant 0 : index
      %c0_11 = arith.constant 0 : index
      %26 = vector.load %arg4[%c0_10, %c0_11] : memref<104x1xi32, #tpu.memory_space<vmem>>, vector<104x1xi32>
      %27 = arith.extui %19 : vector<104x1xi1> to vector<104x1xi32>
      %28 = arith.sitofp %27 : vector<104x1xi32> to vector<104x1xf32>
      %cst_12 = arith.constant dense<0xFF800000> : vector<104xf32>
      %29 = vector.multi_reduction <maximumf>, %24, %cst_12 [1] : vector<104x10xf32> to vector<104xf32>
      %30 = vector.shape_cast %29 : vector<104xf32> to vector<104x1xf32>
      %31 = vector.broadcast %30 : vector<104x1xf32> to vector<104x10xf32>
      %32 = arith.subf %24, %31 : vector<104x10xf32>
      %33 = math.exp %32 : vector<104x10xf32>
      %cst_13 = arith.constant dense<0.000000e+00> : vector<104xf32>
      %34 = vector.multi_reduction <add>, %33, %cst_13 [1] : vector<104x10xf32> to vector<104xf32>
      %35 = vector.shape_cast %34 : vector<104xf32> to vector<104x1xf32>
      %cst_14 = arith.constant 1.000000e+00 : f32
      %36 = vector.broadcast %cst_14 : f32 to vector<104x1xf32>
      %37 = arith.divf %36, %35 : vector<104x1xf32>
      %38 = tpu.iota {dimensions = array<i32: 1>} : vector<104x10xi32>
      %39 = vector.broadcast %30 : vector<104x1xf32> to vector<104x10xf32>
      %40 = arith.cmpf oeq, %24, %39 : vector<104x10xf32>
      %c2147483647_i32 = arith.constant 2147483647 : i32
      %41 = vector.broadcast %c2147483647_i32 : i32 to vector<104x10xi32>
      %42 = arith.select %40, %38, %41 : vector<104x10xi1>, vector<104x10xi32>
      %cst_15 = arith.constant dense<2147483647> : vector<104xi32>
      %43 = vector.multi_reduction <minsi>, %42, %cst_15 [1] : vector<104x10xi32> to vector<104xi32>
      %44 = vector.shape_cast %43 : vector<104xi32> to vector<104x1xi32>
      %45 = arith.cmpi eq, %44, %26 : vector<104x1xi32>
      %46 = arith.extui %45 : vector<104x1xi1> to vector<104x1xi32>
      %47 = arith.sitofp %46 : vector<104x1xi32> to vector<104x1xf32>
      %cst_16 = arith.constant 1.500000e+01 : f32
      %48 = vector.broadcast %cst_16 : f32 to vector<104x1xf32>
      %49 = arith.mulf %37, %48 : vector<104x1xf32>
      %50 = math.ceil %49 : vector<104x1xf32>
      %51 = arith.fptosi %50 : vector<104x1xf32> to vector<104x1xi32>
      %c1_i32_17 = arith.constant 1 : i32
      %52 = vector.broadcast %c1_i32_17 : i32 to vector<104x1xi32>
      %53 = arith.subi %51, %52 : vector<104x1xi32>
      %c0_i32_18 = arith.constant 0 : i32
      %c14_i32 = arith.constant 14 : i32
      %54 = vector.broadcast %c0_i32_18 : i32 to vector<104x1xi32>
      %55 = arith.maxsi %54, %53 : vector<104x1xi32>
      %56 = vector.broadcast %c14_i32 : i32 to vector<104x1xi32>
      %57 = arith.minsi %56, %55 : vector<104x1xi32>
      %58 = tpu.iota {dimensions = array<i32: 1>} : vector<104x128xi32>
      %59 = vector.broadcast %57 : vector<104x1xi32> to vector<104x128xi32>
      %60 = arith.cmpi eq, %58, %59 : vector<104x128xi32>
      %61 = arith.extui %60 : vector<104x128xi1> to vector<104x128xi32>
      %62 = arith.sitofp %61 : vector<104x128xi32> to vector<104x128xf32>
      %63 = tpu.iota {dimensions = array<i32: 1>} : vector<104x8xi32>
      %c0_i32_19 = arith.constant 0 : i32
      %64 = vector.broadcast %c0_i32_19 : i32 to vector<104x8xi32>
      %65 = arith.cmpi eq, %63, %64 : vector<104x8xi32>
      %c1_i32_20 = arith.constant 1 : i32
      %66 = vector.broadcast %c1_i32_20 : i32 to vector<104x8xi32>
      %67 = arith.cmpi eq, %63, %66 : vector<104x8xi32>
      %68 = arith.mulf %37, %28 : vector<104x1xf32>
      %c2_i32 = arith.constant 2 : i32
      %69 = vector.broadcast %c2_i32 : i32 to vector<104x8xi32>
      %70 = arith.cmpi eq, %63, %69 : vector<104x8xi32>
      %71 = arith.mulf %47, %28 : vector<104x1xf32>
      %cst_21 = arith.constant 0.000000e+00 : f32
      %72 = vector.shape_cast %71 : vector<104x1xf32> to vector<104x1xf32>
      %73 = vector.broadcast %72 : vector<104x1xf32> to vector<104x8xf32>
      %74 = vector.broadcast %cst_21 : f32 to vector<104x8xf32>
      %75 = arith.select %70, %73, %74 : vector<104x8xi1>, vector<104x8xf32>
      %76 = vector.shape_cast %68 : vector<104x1xf32> to vector<104x1xf32>
      %77 = vector.broadcast %76 : vector<104x1xf32> to vector<104x8xf32>
      %78 = arith.select %67, %77, %75 : vector<104x8xi1>, vector<104x8xf32>
      %79 = vector.shape_cast %28 : vector<104x1xf32> to vector<104x1xf32>
      %80 = vector.broadcast %79 : vector<104x1xf32> to vector<104x8xf32>
      %81 = arith.select %65, %80, %78 : vector<104x8xi1>, vector<104x8xf32>
      %cst_22 = arith.constant dense<0.000000e+00> : vector<8x128xf32>
      %82 = tpu.matmul %81, %62, %cst_22 {dimension_numbers = #tpu.dot_dimension_numbers<[0], [0], [1], [1], [0, 1, 1, 1], [], []>} : vector<104x8xf32>, vector<104x128xf32>, vector<8x128xf32> -> vector<8x128xf32>
      %83 = vector.shape_cast %82 : vector<8x128xf32> to vector<1x8x128xf32>
      %84 = arith.addf %25, %83 : vector<1x8x128xf32>
      %c0_23 = arith.constant 0 : index
      %c0_24 = arith.constant 0 : index
      %c0_25 = arith.constant 0 : index
      %85 = vector.load %arg5[%c0_23, %c0_24, %c0_25] : memref<1x8x128xf32, #tpu.memory_space<vmem>>, vector<1x8x128xf32>
      tpu.vector_store %arg5[%c0_23, %c0_24, %c0_25], %84 {strides = array<i32>} : memref<1x8x128xf32, #tpu.memory_space<vmem>>, vector<1x8x128xf32>,
    } else {
    }
    return
  }
  func.func @transform_0(%arg0: i32, %arg1: i32, %arg2: memref<1xi32, #tpu.memory_space<smem>>) -> (i32, i32) {
    %c1_i32 = arith.constant 1 : i32
    %0 = arith.muli %arg0, %c1_i32 : i32
    %1 = arith.addi %0, %arg1 : i32
    %c0_i32 = arith.constant 0 : i32
    %2 = arith.minsi %1, %c0_i32 : i32
    %c0_i32_0 = arith.constant 0 : i32
    %c0_i32_1 = arith.constant 0 : i32
    return %2, %c0_i32_0 : i32, i32
  }
  func.func @transform_1(%arg0: i32, %arg1: i32, %arg2: memref<1xi32, #tpu.memory_space<smem>>) -> (i32, i32) {
    %c1_i32 = arith.constant 1 : i32
    %0 = arith.muli %arg0, %c1_i32 : i32
    %1 = arith.addi %0, %arg1 : i32
    %c0_i32 = arith.constant 0 : i32
    %2 = arith.minsi %1, %c0_i32 : i32
    %c0_i32_0 = arith.constant 0 : i32
    %c0_i32_1 = arith.constant 0 : i32
    return %2, %c0_i32_0 : i32, i32
  }
  func.func @transform_2(%arg0: i32, %arg1: i32, %arg2: memref<1xi32, #tpu.memory_space<smem>>) -> (i32, i32, i32) {
    %c0_i32 = arith.constant 0 : i32
    %c0_i32_0 = arith.constant 0 : i32
    %c0_i32_1 = arith.constant 0 : i32
    return %arg0, %c0_i32, %c0_i32_0 : i32, i32, i32
  }
}

</mosaic_0001>

<bundles_post_ra>
// kernel: ece_loss.1
= control target key start
LH: loop header
LB: loop body
LE: loop exit
PB: predicated region body
PF: predicated region fallthrough
CT: control target
= control target key end

     0   :  { %v2241_v0 = vmov 0.0   ;;  %s3660_s0 = inlined_call_operand.<no memory space> [shape: s32[1], index: 0, kind: input, shape index: {}]   ;;  %s3661_s1 = inlined_call_operand.vmem [shape: f32[100,10], index: 1, kind: input, shape index: {}]   ;;  %s3662_s2 = inlined_call_operand.vmem [shape: s32[100,1], index: 2, kind: input, shape index: {}]   ;;  %s3663_s3 = inlined_call_operand.vmem [shape: f32[1,8,128], index: 3, kind: output, shape index: {}]  }
   0x1   :  { %82 = vst [vmem:[%s3663_s3] sm:$0xff] %v2241_v0  ;;  %p1814_p0 = scmp.lt.s32.totalorder %s3660_s0, 104 }
   0x2   :  { %v2283_v1 = vld [vmem:[%s3661_s1] sm:$0xff] (!%p1814_p0)  ;;  %vm117_vm0 = vcmask (!%p1814_p0), 80896   ;;  %v2288_v2 = vld [vmem:[%s3661_s1 + $0x10] sm:$0xff] (!%p1814_p0)  ;;  %v2293_v3 = vld [vmem:[%s3661_s1 + $0x8] sm:$0xff] (!%p1814_p0)  ;;  %v261_v27 = vlaneseq (!%p1814_p0) }
   0x3   :  { %89 = sbr.rel (%p1814_p0) target bundleno = 959 (0x3bf), region = 17  ;;  %v118_v4 = vsel (!%p1814_p0), %vm117_vm0, %v2283_v1, -inf  ;;  %v124_v5 = vsel (!%p1814_p0), %vm117_vm0, %v2288_v2, -inf  ;;  %v2302_v6 = vld [vmem:[%s3661_s1 + $0x18] sm:$0xff] (!%p1814_p0)  ;;  %v121_v7 = vsel (!%p1814_p0), %vm117_vm0, %v2293_v3, -inf  ;;  %v2311_v9 = vld [vmem:[%s3661_s1 + $0x20] sm:$0xff] (!%p1814_p0) }
   0x4   :  { %119 = vmax.xlane.f32.xlu0 (!%p1814_p0), %v118_v4  ;;  %125 = vmax.xlane.f32.xlu1 (!%p1814_p0), %v124_v5  ;;  %v127_v8 = vsel (!%p1814_p0), %vm117_vm0, %v2302_v6, -inf  ;;  %v2316_v10 = vld [vmem:[%s3661_s1 + $0x28] sm:$0xff] (!%p1814_p0)  ;;  %v130_v11 = vsel (!%p1814_p0), %vm117_vm0, %v2311_v9, -inf  ;;  %v2325_v13 = vld [vmem:[%s3661_s1 + $0x30] sm:$0xff] (!%p1814_p0)  ;;  %v2330_v14 = vld [vmem:[%s3661_s1 + $0x38] sm:$0xff] (!%p1814_p0)  ;;  %v2371_v28 = vand.u32 (!%p1814_p0), 127, %v261_v27 }
   0x5   :  { %v133_v12 = vsel (!%p1814_p0), %vm117_vm0, %v2316_v10, -inf  ;;  %v136_v15 = vsel (!%p1814_p0), %vm117_vm0, %v2325_v13, -inf  ;;  %v139_v16 = vsel (!%p1814_p0), %vm117_vm0, %v2330_v14, -inf  ;;  %v2339_v17 = vld [vmem:[%s3661_s1 + $0x40] sm:$0xff] (!%p1814_p0)  ;;  %v2344_v18 = vld [vmem:[%s3661_s1 + $0x48] sm:$0xff] (!%p1814_p0)  ;;  %v2353_v21 = vld [vmem:[%s3661_s1 + $0x50] sm:$0xff] (!%p1814_p0) }
   0x6   :  { %v142_v19 = vsel (!%p1814_p0), %vm117_vm0, %v2339_v17, -inf  ;;  %v145_v20 = vsel (!%p1814_p0), %vm117_vm0, %v2344_v18, -inf  ;;  %v2358_v22 = vld [vmem:[%s3661_s1 + $0x58] sm:$0xff] (!%p1814_p0)  ;;  %v148_v23 = vsel (!%p1814_p0), %vm117_vm0, %v2353_v21, -inf  ;;  %v2367_v25 = vld [vmem:[%s3661_s1 + $0x60] sm:$0xff] (!%p1814_p0) }
   0x7   :  { %v151_v24 = vsel (!%p1814_p0), %vm117_vm0, %v2358_v22, -inf  ;;  %v154_v26 = vsel (!%p1814_p0), %vm117_vm0, %v2367_v25, -inf }
   0x8   :  { %122 = vmax.xlane.f32.xlu0 (!%p1814_p0), %v121_v7  ;;  %128 = vmax.xlane.f32.xlu1 (!%p1814_p0), %v127_v8 }
   0xc   :  { %131 = vmax.xlane.f32.xlu0 %v130_v11  ;;  %134 = vmax.xlane.f32.xlu1 %v133_v12 }
  0x10   :  { %137 = vmax.xlane.f32.xlu0 %v136_v15  ;;  %140 = vmax.xlane.f32.xlu1 %v139_v16 }
  0x14   :  { %143 = vmax.xlane.f32.xlu0 %v142_v19  ;;  %146 = vmax.xlane.f32.xlu1 %v145_v20 }
  0x18   :  { %149 = vmax.xlane.f32.xlu0 %v148_v23  ;;  %152 = vmax.xlane.f32.xlu1 %v151_v24 }
  0x1c   :  { %155 = vmax.xlane.f32.xlu0 %v154_v26 }
  0x91   :  { %v120_v29 = vpop.xlane.xlu0 %119  ;;  %v126_v30 = vpop.xlane.xlu1 %125 }
  0x92   :  { %vm263_vm1 = vcmp.eq.f32.partialorder %v2283_v1, %v120_v29  ;;  %vm265_vm2 = vcmp.eq.f32.partialorder %v2288_v2, %v126_v30  ;;  %v157_v48 = vsub.f32 %v2283_v1, %v120_v29  ;;  %v159_v59 = vsub.f32 %v2288_v2, %v126_v30 }
  0x93   :  { %v276_v31 = vsel %vm263_vm1, %v2371_v28, 2147483647  ;;  %v278_v32 = vsel %vm265_vm2, %v2371_v28, 2147483647 }
  0x94   :  { %v2378_v33 = vsel %vm117_vm0, %v276_v31, 2147483647  ;;  %v2383_v37 = vsel %vm117_vm0, %v278_v32, 2147483647  ;;  %v170_v58 = vmul.f32 1.442695, %v157_v48 }
  0x95   :  { %v123_v34 = vpop.xlane.xlu0 %122  ;;  %v129_v35 = vpop.xlane.xlu1 %128  ;;  %v291_v36 = vshra.s32 %v2378_v33, 16  ;;  %v321_v43 = vshra.s32 %v2383_v37, 16  ;;  %v174_v11 = vmul.f32 1.442695, %v159_v59 }
  0x96   :  { %vm264_vm3 = vcmp.eq.f32.partialorder %v2293_v3, %v123_v34  ;;  %vm266_vm4 = vcmp.eq.f32.partialorder %v2302_v6, %v129_v35  ;;  %v158_v61 = vsub.f32 %v2293_v3, %v123_v34  ;;  %v160_v5 = vsub.f32 %v2302_v6, %v129_v35 }
  0x97   :  { %v277_v38 = vsel %vm264_vm3, %v2371_v28, 2147483647  ;;  %v2387_v39 = vcvt.s32.f32 %v291_v36  ;;  %v279_v40 = vsel %vm266_vm4, %v2371_v28, 2147483647  ;;  %v2407_v47 = vcvt.s32.f32 %v321_v43 }
  0x98   :  { %v2399_v44 = vsel %vm117_vm0, %v277_v38, 2147483647  ;;  %v2402_v45 = vsel %vm117_vm0, %v279_v40, 2147483647  ;;  %2135 = vpow2.f32 %v170_v58  ;;  %v172_v12 = vmul.f32 1.442695, %v158_v61 }
  0x99   :  { %294 = vmin.xlane.f32.xlu1 %v2387_v39  ;;  %v2391_v41 = vpop.xlane.xlu0 %131  ;;  %v2393_v42 = vpop.xlane.xlu1 %134  ;;  %v306_v50 = vshra.s32 %v2399_v44, 16  ;;  %v336_v53 = vshra.s32 %v2402_v45, 16  ;;  %v176_v24 = vmul.f32 1.442695, %v160_v5  ;;  %2137 = vpow2.f32 %v174_v11 }
  0x9a   :  { %vm267_vm5 = vcmp.eq.f32.partialorder %v2311_v9, %v2391_v41  ;;  %vm268_vm6 = vcmp.eq.f32.partialorder %v2316_v10, %v2393_v42  ;;  %v161_v29 = vsub.f32 %v2311_v9, %v2391_v41  ;;  %v162_v32 = vsub.f32 %v2316_v10, %v2393_v42 }
  0x9b   :  { %v280_v46 = vsel %vm267_vm5, %v2371_v28, 2147483647  ;;  %v281_v49 = vsel %vm268_vm6, %v2371_v28, 2147483647  ;;  %v2426_v56 = vcvt.s32.f32 %v306_v50  ;;  %v2435_v62 = vcvt.s32.f32 %v336_v53 }
  0x9c   :  { %v2421_v54 = vsel %vm117_vm0, %v280_v46, 2147483647  ;;  %v2424_v55 = vsel %vm117_vm0, %v281_v49, 2147483647  ;;  %2139 = vpow2.f32 %v172_v12  ;;  %v178_v42 = vmul.f32 1.442695, %v161_v29 }
  0x9d   :  { %324 = vmin.xlane.f32.xlu1 %v2407_v47  ;;  %v2413_v51 = vpop.xlane.xlu0 %137  ;;  %v2415_v52 = vpop.xlane.xlu1 %140  ;;  %309 = vmin.xlane.f32.xlu0 %v2426_v56  ;;  %v351_v63 = vshra.s32 %v2421_v54, 16  ;;  %v366_v4 = vshra.s32 %v2424_v55, 16  ;;  %2141 = vpow2.f32 %v176_v24  ;;  %v180_v48 = vmul.f32 1.442695, %v162_v32 }
  0x9e   :  { %vm269_vm7 = vcmp.eq.f32.partialorder %v2325_v13, %v2413_v51  ;;  %vm270_vm8 = vcmp.eq.f32.partialorder %v2330_v14, %v2415_v52  ;;  %v163_v49 = vsub.f32 %v2325_v13, %v2413_v51  ;;  %v164_v50 = vsub.f32 %v2330_v14, %v2415_v52 }
  0x9f   :  { %v282_v57 = vsel %vm269_vm7, %v2371_v28, 2147483647  ;;  %v283_v60 = vsel %vm270_vm8, %v2371_v28, 2147483647  ;;  %v2452_v7 = vcvt.s32.f32 %v351_v63  ;;  %v2460_v15 = vcvt.s32.f32 %v366_v4 }
  0xa0   :  { %v2447_v2 = vsel %vm117_vm0, %v282_v57, 2147483647  ;;  %v2450_v3 = vsel %vm117_vm0, %v283_v60, 2147483647  ;;  %2143 = vpow2.f32 %v178_v42  ;;  %v182_v13 = vmul.f32 1.442695, %v163_v49 }
  0xa1   :  { %v2438_v0 = vpop.xlane.xlu0 %143  ;;  %v2440_v1 = vpop.xlane.xlu1 %146  ;;  %339 = vmin.xlane.f32.xlu0 %v2435_v62  ;;  %354 = vmin.xlane.f32.xlu1 %v2452_v7  ;;  %v381_v16 = vshra.s32 %v2447_v2, 16  ;;  %v396_v23 = vshra.s32 %v2450_v3, 16  ;;  %2145 = vpow2.f32 %v180_v48  ;;  %v184_v14 = vmul.f32 1.442695, %v164_v50 }
  0xa2   :  { %vm271_vm9 = vcmp.eq.f32.partialorder %v2339_v17, %v2438_v0  ;;  %vm272_vm10 = vcmp.eq.f32.partialorder %v2344_v18, %v2440_v1  ;;  %v2136_v61 = vpop.eup %2135  ;;  %2147 = vpow2.f32 %v182_v13  ;;  %v320_v48 = vand.u32 65535, %v2383_v37 }
  0xa3   :  { %v284_v8 = vsel %vm271_vm9, %v2371_v28, 2147483647  ;;  %v285_v6 = vsel %vm272_vm10, %v2371_v28, 2147483647  ;;  %v2478_v30 = vcvt.s32.f32 %v381_v16  ;;  %v2488_v35 = vcvt.s32.f32 %v396_v23  ;;  %v2138_v63 = vpop.eup %2137 }
  0xa4   :  { %v2471_v26 = vsel %vm117_vm0, %v284_v8, 2147483647  ;;  %v2474_v27 = vsel %vm117_vm0, %v285_v6, 2147483647  ;;  %2149 = vpow2.f32 %v184_v14  ;;  %v196_v11 = vsel %vm117_vm0, %v2136_v61, 0.0 }
  0xa5   :  { %v2463_v19 = vpop.xlane.xlu0 %149  ;;  %v2465_v20 = vpop.xlane.xlu1 %152  ;;  %369 = vmin.xlane.f32.xlu0 %v2460_v15  ;;  %384 = vmin.xlane.f32.xlu1 %v2478_v30  ;;  %v411_v9 = vshra.s32 %v2471_v26, 16  ;;  %v426_v38 = vshra.s32 %v2474_v27, 16  ;;  %v202_v16 = vsel %vm117_vm0, %v2138_v63, 0.0  ;;  %v350_v37 = vand.u32 65535, %v2421_v54 }
  0xa6   :  { %vm273_vm11 = vcmp.eq.f32.partialorder %v2353_v21, %v2463_v19  ;;  %vm274_vm12 = vcmp.eq.f32.partialorder %v2358_v22, %v2465_v20  ;;  %v2140_v4 = vpop.eup %2139  ;;  %v335_v14 = vand.u32 65535, %v2402_v45  ;;  %v165_v54 = vsub.f32 %v2339_v17, %v2438_v0 }
  0xa7   :  { %v286_v31 = vsel %vm273_vm11, %v2371_v28, 2147483647  ;;  %v287_v34 = vsel %vm274_vm12, %v2371_v28, 2147483647  ;;  %v2503_v43 = vcvt.s32.f32 %v411_v9  ;;  %v2515_v57 = vcvt.s32.f32 %v426_v38  ;;  %v2142_v5 = vpop.eup %2141 }
  0xa8   :  { %v2495_v40 = vsel %vm117_vm0, %v286_v31, 2147483647  ;;  %v2501_v41 = vsel %vm117_vm0, %v287_v34, 2147483647  ;;  %v199_v8 = vsel %vm117_vm0, %v2140_v4, 0.0  ;;  %v205_v12 = vsel %vm117_vm0, %v2142_v5, 0.0 }
  0xa9   :  { %v2491_v36 = vpop.xlane.xlu0 %155  ;;  %v441_v10 = vshra.s32 %v2495_v40, 16  ;;  %399 = vmin.xlane.f32.xlu0 %v2488_v35  ;;  %414 = vmin.xlane.f32.xlu1 %v2503_v43  ;;  %v456_v59 = vshra.s32 %v2501_v41, 16  ;;  %v2242_v38 = vmov 0.0|0.0   ;;  %v352_v4 = vcvt.s32.f32 %v350_v37 }
  0xaa   :  { %vm275_vm13 = vcmp.eq.f32.partialorder %v2367_v25, %v2491_v36  ;;  %v2144_v6 = vpop.eup %2143  ;;  %2022 = vmatprep.subr.bf16.mxu0 %v2242_v38  ;;  %v380_v5 = vand.u32 65535, %v2447_v2  ;;  %v410_v17 = vand.u32 65535, %v2471_v26  ;;  %v395_v0 = vand.u32 65535, %v2450_v3 }
  0xab   :  { %v288_v46 = vsel %vm275_vm13, %v2371_v28, 2147483647  ;;  %v2517_v58 = vcvt.s32.f32 %v441_v10  ;;  %v2523_v51 = vcvt.s32.f32 %v456_v59  ;;  %v2146_v23 = vpop.eup %2145  ;;  %v208_v31 = vsel %vm117_vm0, %v2144_v6, 0.0 }
  0xac   :  { %v2511_v53 = vsel %vm117_vm0, %v288_v46, 2147483647  ;;  %v2148_v24 = vpop.eup %2147  ;;  %v211_v29 = vsel %vm117_vm0, %v2146_v23, 0.0  ;;  %v290_v10 = vand.u32 65535, %v2378_v33  ;;  %v322_v59 = vcvt.s32.f32 %v320_v48 }
  0xad   :  { %v471_v60 = vshra.s32 %v2511_v53, 16  ;;  %429 = vmin.xlane.f32.xlu0 %v2515_v57  ;;  %444 = vmin.xlane.f32.xlu1 %v2517_v58  ;;  %v214_v9 = vsel %vm117_vm0, %v2148_v24, 0.0  ;;  %v412_v24 = vcvt.s32.f32 %v410_v17  ;;  %v397_v26 = vcvt.s32.f32 %v395_v0 }
  0xae   :  { %v2150_v32 = vpop.eup %2149  ;;  %v292_v46 = vcvt.s32.f32 %v290_v10  ;;  %v440_v3 = vand.u32 65535, %v2495_v40 }
  0xaf   :  { %v2525_v52 = vcvt.s32.f32 %v471_v60  ;;  %v217_v34 = vsel %vm117_vm0, %v2150_v32, 0.0  ;;  %v305_v60 = vand.u32 65535, %v2399_v44  ;;  %v168_v32 = vsub.f32 %v2358_v22, %v2465_v20 }
  0xb1   :  { %459 = vmin.xlane.f32.xlu0 %v2523_v51  ;;  %474 = vmin.xlane.f32.xlu1 %v2525_v52  ;;  %v307_v13 = vcvt.s32.f32 %v305_v60 }
  0xb5   :  { %200 = vadd.xlane.f32.xlu0 %v199_v8  ;;  %197 = vadd.xlane.f32.xlu1 %v196_v11  ;;  %v365_v8 = vand.u32 65535, %v2424_v55  ;;  %v166_v11 = vsub.f32 %v2344_v18, %v2440_v1  ;;  %v382_v55 = vcvt.s32.f32 %v380_v5 }
  0xb7   :  { %v188_v1 = vmul.f32 1.442695, %v166_v11 }
  0xb9   :  { %206 = vadd.xlane.f32.xlu0 %v205_v12  ;;  %203 = vadd.xlane.f32.xlu1 %v202_v16  ;;  %v367_v12 = vcvt.s32.f32 %v365_v8 }
  0xbd   :  { %212 = vadd.xlane.f32.xlu0 %v211_v29  ;;  %209 = vadd.xlane.f32.xlu1 %v208_v31  ;;  %v425_v29 = vand.u32 65535, %v2474_v27 }
  0xc1   :  { %218 = vadd.xlane.f32.xlu0 %v217_v34  ;;  %215 = vadd.xlane.f32.xlu1 %v214_v9  ;;  %v442_v34 = vcvt.s32.f32 %v440_v3  ;;  %v427_v9 = vcvt.s32.f32 %v425_v29 }
 0x126   :  { %v2539_v42 = vpop.xlane.xlu1 %294 }
 0x127   :  { %vm296_vm14 = vcmp.eq.f32.partialorder %v2387_v39, %v2539_v42 }
 0x128   :  { %v297_v49 = vsel %vm296_vm14, %v292_v46, inf }
 0x129   :  { %298 = vmin.xlane.f32.xlu0 %v297_v49 }
 0x12a   :  { %v2544_v50 = vpop.xlane.xlu1 %324  ;;  %v2549_v33 = vpop.xlane.xlu0 %309 }
 0x12b   :  { %vm326_vm15 = vcmp.eq.f32.partialorder %v2407_v47, %v2544_v50  ;;  %vm311_vm1 = vcmp.eq.f32.partialorder %v2426_v56, %v2549_v33  ;;  %v337_v47 = vcvt.s32.f32 %v335_v14 }
 0x12c   :  { %v327_v61 = vsel %vm326_vm15, %v322_v59, inf  ;;  %v312_v39 = vsel %vm311_vm1, %v307_v13, inf }
 0x12d   :  { %328 = vmin.xlane.f32.xlu0 %v327_v61  ;;  %313 = vmin.xlane.f32.xlu1 %v312_v39  ;;  %v2243_v61 = vmov 0  }
 0x12e   :  { %v2555_v63 = vpop.xlane.xlu1 %354  ;;  %v2557_v44 = vpop.xlane.xlu0 %339  ;;  %2123 = vset.pattern.permute.xlu0 %v2243_v61  ;;  %2129 = vset.pattern.permute.xlu1 %v2243_v61 }
 0x12f   :  { %vm356_vm2 = vcmp.eq.f32.partialorder %v2452_v7, %v2555_v63  ;;  %vm341_vm3 = vcmp.eq.f32.partialorder %v2435_v62, %v2557_v44  ;;  %v186_v7 = vmul.f32 1.442695, %v165_v54 }
 0x130   :  { %v357_v45 = vsel %vm356_vm2, %v352_v4, inf  ;;  %v342_v56 = vsel %vm341_vm3, %v337_v47, inf }
 0x131   :  { %358 = vmin.xlane.f32.xlu0 %v357_v45  ;;  %343 = vmin.xlane.f32.xlu1 %v342_v56  ;;  %2151 = vpow2.f32 %v186_v7 }
 0x132   :  { %v2569_v6 = vpop.xlane.xlu1 %384  ;;  %v2571_v2 = vpop.xlane.xlu0 %369  ;;  %2153 = vpow2.f32 %v188_v1 }
 0x133   :  { %vm386_vm4 = vcmp.eq.f32.partialorder %v2478_v30, %v2569_v6  ;;  %vm371_vm5 = vcmp.eq.f32.partialorder %v2460_v15, %v2571_v2  ;;  %v167_v30 = vsub.f32 %v2353_v21, %v2463_v19  ;;  %v470_v21 = vand.u32 65535, %v2511_v53 }
 0x134   :  { %v387_v18 = vsel %vm386_vm4, %v382_v55, inf  ;;  %v372_v62 = vsel %vm371_vm5, %v367_v12, inf  ;;  %v455_v19 = vand.u32 65535, %v2501_v41 }
 0x135   :  { %388 = vmin.xlane.f32.xlu0 %v387_v18  ;;  %373 = vmin.xlane.f32.xlu1 %v372_v62  ;;  %v472_v53 = vcvt.s32.f32 %v470_v21 }
 0x136   :  { %v2579_v16 = vpop.xlane.xlu1 %414  ;;  %v2581_v23 = vpop.xlane.xlu0 %399  ;;  %v457_v48 = vcvt.s32.f32 %v455_v19 }
 0x137   :  { %vm416_vm6 = vcmp.eq.f32.partialorder %v2503_v43, %v2579_v16  ;;  %vm401_vm7 = vcmp.eq.f32.partialorder %v2488_v35, %v2581_v23  ;;  %v190_v43 = vmul.f32 1.442695, %v167_v30  ;;  %v192_v35 = vmul.f32 1.442695, %v168_v32 }
 0x138   :  { %v417_v15 = vsel %vm416_vm6, %v412_v24, inf  ;;  %v402_v31 = vsel %vm401_vm7, %v397_v26, inf }
 0x139   :  { %418 = vmin.xlane.f32.xlu0 %v417_v15  ;;  %403 = vmin.xlane.f32.xlu1 %v402_v31  ;;  %2155 = vpow2.f32 %v190_v43 }
 0x13a   :  { %v2593_v40 = vpop.xlane.xlu1 %444  ;;  %v2595_v27 = vpop.xlane.xlu0 %429  ;;  %2157 = vpow2.f32 %v192_v35 }
 0x13b   :  { %vm446_vm8 = vcmp.eq.f32.partialorder %v2517_v58, %v2593_v40  ;;  %vm431_vm9 = vcmp.eq.f32.partialorder %v2515_v57, %v2595_v27  ;;  %v2152_v58 = vpop.eup %2151 }
 0x13c   :  { %v447_v22 = vsel %vm446_vm8, %v442_v34, inf  ;;  %v432_v20 = vsel %vm431_vm9, %v427_v9, inf  ;;  %v220_v60 = vsel %vm117_vm0, %v2152_v58, 0.0  ;;  %v2154_v13 = vpop.eup %2153 }
 0x13d   :  { %448 = vmin.xlane.f32.xlu0 %v447_v22  ;;  %433 = vmin.xlane.f32.xlu1 %v432_v20 }
 0x13e   :  { %v2603_v10 = vpop.xlane.xlu1 %474  ;;  %v2605_v46 = vpop.xlane.xlu0 %459 }
 0x13f   :  { %vm476_vm10 = vcmp.eq.f32.partialorder %v2525_v52, %v2603_v10  ;;  %vm461_vm11 = vcmp.eq.f32.partialorder %v2523_v51, %v2605_v46  ;;  %v223_v51 = vsel %vm117_vm0, %v2154_v13, 0.0 }
 0x140   :  { %v477_v41 = vsel %vm476_vm10, %v472_v53, inf  ;;  %v462_v57 = vsel %vm461_vm11, %v457_v48, inf }
 0x141   :  { %478 = vmin.xlane.f32.xlu0 %v477_v41  ;;  %463 = vmin.xlane.f32.xlu1 %v462_v57 }
 0x142   :  { %v198_v49 = vpop.xlane.xlu1 %197  ;;  %v201_v59 = vpop.xlane.xlu0 %200 }
 0x143   :  { %2159 = vrcp.f32 %v198_v49  ;;  %v2156_v14 = vpop.eup %2155 }
 0x144   :  { %2161 = vrcp.f32 %v201_v59  ;;  %v2158_v47 = vpop.eup %2157  ;;  %v226_v5 = vsel %vm117_vm0, %v2156_v14, 0.0 }
 0x145   :  { %221 = vadd.xlane.f32.xlu1 %v220_v60  ;;  %v229_v12 = vsel %vm117_vm0, %v2158_v47, 0.0 }
 0x146   :  { %v204_v52 = vpop.xlane.xlu1 %203  ;;  %v207_v37 = vpop.xlane.xlu0 %206 }
 0x147   :  { %2163 = vrcp.f32 %v204_v52 }
 0x148   :  { %2165 = vrcp.f32 %v207_v37 }
 0x149   :  { %224 = vadd.xlane.f32.xlu1 %v223_v51 }
 0x14a   :  { %v210_v39 = vpop.xlane.xlu1 %209  ;;  %v213_v4 = vpop.xlane.xlu0 %212 }
 0x14b   :  { %2167 = vrcp.f32 %v210_v39 }
 0x14c   :  { %2169 = vrcp.f32 %v213_v4 }
 0x14d   :  { %v2614_v8 = vpop.eup %2159  ;;  %227 = vadd.xlane.f32.xlu1 %v226_v5 }
 0x14e   :  { %v2616_v54 = vpop.eup %2161  ;;  %v523_v45 = vmul.f32 15.0, %v2614_v8  ;;  %v216_v56 = vpop.xlane.xlu1 %215 }
 0x14f   :  { %v524_v11 = vmul.f32 15.0, %v2616_v54  ;;  %v219_v55 = vpop.xlane.xlu0 %218  ;;  %2171 = vrcp.f32 %v216_v56 }
 0x150   :  { %v536_v17 = vceil.f32 %v523_v45  ;;  %2173 = vrcp.f32 %v219_v55  ;;  %v2244_v45 = vmov 1.0|1.0  }
 0x151   :  { %v2621_v0 = vpop.eup %2163  ;;  %230 = vadd.xlane.f32.xlu1 %v229_v12  ;;  %v537_v7 = vceil.f32 %v524_v11 }
 0x152   :  { %v2623_v18 = vpop.eup %2165  ;;  %v2058_v62 = vtrunc.f32 %v536_v17  ;;  %v525_v1 = vmul.f32 15.0, %v2621_v0 }
 0x153   :  { %v2060_v24 = vtrunc.f32 %v537_v7  ;;  %v526_v26 = vmul.f32 15.0, %v2623_v18 }
 0x154   :  { %v2059_v3 = vcvt.f32.s32 %v2058_v62  ;;  %v538_v29 = vceil.f32 %v525_v1 }
 0x155   :  { %v2627_v30 = vpop.eup %2167  ;;  %v2061_v15 = vcvt.f32.s32 %v2060_v24  ;;  %v539_v31 = vceil.f32 %v526_v26 }
 0x156   :  { %v2629_v32 = vpop.eup %2169  ;;  %v1828_v34 = vadd.s32 4294967295, %v2059_v3  ;;  %v2062_v9 = vtrunc.f32 %v538_v29  ;;  %v527_v21 = vmul.f32 15.0, %v2627_v30 }
 0x157   :  { %v1829_v19 = vadd.s32 4294967295, %v2061_v15  ;;  %v2064_v43 = vtrunc.f32 %v539_v31  ;;  %v528_v22 = vmul.f32 15.0, %v2629_v32 }
 0x158   :  { %vm575_vm12 = vcmp.gt.s32.totalorder %v1828_v34, 0  ;;  %v2063_v20 = vcvt.f32.s32 %v2062_v9  ;;  %v540_v35 = vceil.f32 %v527_v21 }
 0x159   :  { %v576_v53 = vsel %vm575_vm12, %v1828_v34, 0  ;;  %vm577_vm13 = vcmp.gt.s32.totalorder %v1829_v19, 0  ;;  %v2065_v48 = vcvt.f32.s32 %v2064_v43  ;;  %v541_v41 = vceil.f32 %v528_v22  ;;  %v2633_v59 = vpop.eup %2171 }
 0x15a   :  { %v578_v57 = vsel %vm577_vm13, %v1829_v19, 0  ;;  %vm601_vm14 = vcmp.lt.s32.totalorder %v576_v53, 14  ;;  %v1830_v58 = vadd.s32 4294967295, %v2063_v20  ;;  %v2066_v49 = vtrunc.f32 %v540_v35  ;;  %v2635_v52 = vpop.eup %2173 }
 0x15b   :  { %v602_v60 = vsel %vm601_vm14, %v576_v53, 14  ;;  %vm603_vm15 = vcmp.lt.s32.totalorder %v578_v57, 14  ;;  %v1831_v61 = vadd.s32 4294967295, %v2065_v48  ;;  %v2068_v13 = vtrunc.f32 %v541_v41 }
 0x15c   :  { %v604_v37 = vsel %vm603_vm15, %v578_v57, 14  ;;  %vm627_vm1 = vcmp.eq.s32.totalorder %v2371_v28, %v602_v60  ;;  %vm579_vm2 = vcmp.gt.s32.totalorder %v1830_v58, 0  ;;  %v2067_v51 = vcvt.f32.s32 %v2066_v49 }
 0x15d   :  { %vm628_vm3 = vcmp.eq.s32.totalorder %v2371_v28, %v604_v37  ;;  %v580_v14 = vsel %vm579_vm2, %v1830_v58, 0  ;;  %vm581_vm4 = vcmp.gt.s32.totalorder %v1831_v61, 0  ;;  %v2069_v39 = vcvt.f32.s32 %v2068_v13 }
 0x15e   :  { %vm2023_vm5 = vmpackc.low %vm628_vm3, %vm627_vm1  ;;  %v582_v4 = vsel %vm581_vm4, %v1831_v61, 0  ;;  %vm605_vm6 = vcmp.lt.s32.totalorder %v580_v14, 14  ;;  %v1832_v47 = vadd.s32 4294967295, %v2067_v51  ;;  %v529_v5 = vmul.f32 15.0, %v2633_v59  ;;  %v104_v61 = vld [vmem:[%s3662_s2] sm:$0xff] }
 0x15f   :  { %2024 = vmatpush3.bf16.msk.msra.mxu0 %vm2023_vm5, %v2244_v45  ;;  %v606_v56 = vsel %vm605_vm6, %v580_v14, 14  ;;  %vm607_vm7 = vcmp.lt.s32.totalorder %v582_v4, 14  ;;  %v1833_v11 = vadd.s32 4294967295, %v2069_v39  ;;  %v530_v55 = vmul.f32 15.0, %v2635_v52 }
 0x160   :  { %2025 = vmatprep.subr.bf16.mxu0 %v2242_v38  ;;  %v608_v12 = vsel %vm607_vm7, %v582_v4, 14  ;;  %vm629_vm8 = vcmp.eq.s32.totalorder %v2371_v28, %v606_v56  ;;  %vm583_vm9 = vcmp.gt.s32.totalorder %v1832_v47, 0  ;;  %v542_v17 = vceil.f32 %v529_v5 }
 0x161   :  { %vm630_vm10 = vcmp.eq.s32.totalorder %v2371_v28, %v608_v12  ;;  %v584_v7 = vsel %vm583_vm9, %v1832_v47, 0  ;;  %vm585_vm11 = vcmp.gt.s32.totalorder %v1833_v11, 0  ;;  %v543_v62 = vceil.f32 %v530_v55  ;;  %v106_v47 = vld [vmem:[%s3662_s2 + $0x10] sm:$0xff] }
 0x162   :  { %vm2026_vm12 = vmpackc.low %vm630_vm10, %vm629_vm8  ;;  %v586_v1 = vsel %vm585_vm11, %v1833_v11, 0  ;;  %vm609_vm13 = vcmp.lt.s32.totalorder %v584_v7, 14  ;;  %v2070_v24 = vtrunc.f32 %v542_v17  ;;  %v301_v35 = vcvt.f32.s32 %v2539_v42 }
 0x163   :  { %2027 = vmatpush3.bf16.msk.msra.mxu0 %vm2026_vm12, %v2244_v45  ;;  %v610_v26 = vsel %vm609_vm13, %v584_v7, 14  ;;  %vm611_vm14 = vcmp.lt.s32.totalorder %v586_v1, 14  ;;  %v2072_v3 = vtrunc.f32 %v543_v62  ;;  %v331_v57 = vcvt.f32.s32 %v2544_v50  ;;  %v105_v50 = vld [vmem:[%s3662_s2 + $0x8] sm:$0xff] }
 0x164   :  { %2028 = vmatprep.subr.bf16.mxu0 %v2242_v38  ;;  %v612_v29 = vsel %vm611_vm14, %v586_v1, 14  ;;  %vm631_vm15 = vcmp.eq.s32.totalorder %v2371_v28, %v610_v26  ;;  %v2071_v15 = vcvt.f32.s32 %v2070_v24  ;;  %v302_v41 = vshll.u32 %v301_v35, 16 }
 0x165   :  { %vm632_vm1 = vcmp.eq.s32.totalorder %v2371_v28, %v612_v29  ;;  %v2073_v31 = vcvt.f32.s32 %v2072_v3  ;;  %v316_v58 = vcvt.f32.s32 %v2549_v33  ;;  %v332_v37 = vshll.u32 %v331_v57, 16 }
 0x166   :  { %vm2029_vm2 = vmpackc.low %vm632_vm1, %vm631_vm15  ;;  %v1834_v34 = vadd.s32 4294967295, %v2071_v15  ;;  %v346_v14 = vcvt.f32.s32 %v2557_v44  ;;  %v361_v42 = vcvt.f32.s32 %v2555_v63  ;;  %v107_v63 = vld [vmem:[%s3662_s2 + $0x18] sm:$0xff]  ;;  %v2245_v17 = vmov 0.0  }
 0x167   :  { %2030 = vmatpush3.bf16.msk.msra.mxu0 %vm2029_vm2, %v2244_v45  ;;  %v1835_v9 = vadd.s32 4294967295, %v2073_v31  ;;  %v317_v51 = vshll.u32 %v316_v58, 16  ;;  %v391_v1 = vcvt.f32.s32 %v2569_v6  ;;  %v406_v6 = vcvt.f32.s32 %v2581_v23 }
 0x168   :  { %2031 = vmatprep.subr.bf16.mxu0 %v2242_v38  ;;  %vm587_vm3 = vcmp.gt.s32.totalorder %v1834_v34, 0  ;;  %v347_v11 = vshll.u32 %v346_v14, 16  ;;  %v362_v12 = vshll.u32 %v361_v42, 16  ;;  %v169_v23 = vsub.f32 %v2367_v25, %v2491_v36  ;;  %v112_v25 = vld [vmem:[%s3662_s2 + $0x40] sm:$0xff] }
 0x169   :  { %v588_v21 = vsel %vm587_vm3, %v1834_v34, 0  ;;  %vm589_vm4 = vcmp.gt.s32.totalorder %v1835_v9, 0  ;;  %v407_v57 = vshll.u32 %v406_v6, 16  ;;  %v451_v36 = vcvt.f32.s32 %v2593_v40 }
 0x16a   :  { %v590_v19 = vsel %vm589_vm4, %v1835_v9, 0  ;;  %vm613_vm5 = vcmp.lt.s32.totalorder %v588_v21, 14 }
 0x16b   :  { %v614_v43 = vsel %vm613_vm5, %v588_v21, 14  ;;  %vm615_vm6 = vcmp.lt.s32.totalorder %v590_v19, 14  ;;  %v108_v21 = vld [vmem:[%s3662_s2 + $0x20] sm:$0xff] }
 0x16c   :  { %v616_v22 = vsel %vm615_vm6, %v590_v19, 14  ;;  %vm633_vm7 = vcmp.eq.s32.totalorder %v2371_v28, %v614_v43  ;;  %v392_v19 = vshll.u32 %v391_v1, 16  ;;  %v114_v1 = vld [vmem:[%s3662_s2 + $0x50] sm:$0xff] }
 0x16d   :  { %vm634_vm8 = vcmp.eq.s32.totalorder %v2371_v28, %v616_v22 }
 0x16e   :  { %vm2032_vm9 = vmpackc.low %vm634_vm8, %vm633_vm7 }
 0x16f   :  { %2033 = vmatpush3.bf16.msk.msra.mxu0 %vm2032_vm9, %v2244_v45 }
 0x170   :  { %2034 = vmatprep.subr.bf16.mxu0 %v2242_v38 }
 0x1b6   :  { %v299_v20 = vpop.xlane.xlu0 %298 }
 0x1b7   :  { %v300_v53 = vcvt.f32.s32 %v299_v20 }
 0x1b9   :  { %v303_v49 = vadd.s32 %v302_v41, %v300_v53  ;;  %v421_v41 = vcvt.f32.s32 %v2579_v16 }
 0x1ba   :  { %v329_v48 = vpop.xlane.xlu0 %328  ;;  %v314_v13 = vpop.xlane.xlu1 %313 }
 0x1bb   :  { %v330_v60 = vcvt.f32.s32 %v329_v48  ;;  %v315_v39 = vcvt.f32.s32 %v314_v13  ;;  %vm484_vm10 = vcmp.eq.s32.totalorder %v303_v49, %v104_v61  ;;  %v110_v48 = vld [vmem:[%s3662_s2 + $0x30] sm:$0xff]  ;;  %v111_v13 = vld [vmem:[%s3662_s2 + $0x38] sm:$0xff] }
 0x1bc   :  { %v1815_v7 = vsel %vm484_vm10, 1.0, %v2245_v17 }
 0x1bd   :  { %v318_v33 = vadd.s32 %v317_v51, %v315_v39  ;;  %v333_v4 = vadd.s32 %v332_v37, %v330_v60  ;;  %v422_v37 = vshll.u32 %v421_v41, 16  ;;  %v436_v51 = vcvt.f32.s32 %v2595_v27 }
 0x1be   :  { %v344_v5 = vpop.xlane.xlu1 %343  ;;  %v359_v56 = vpop.xlane.xlu0 %358 }
 0x1bf   :  { %vm485_vm11 = vcmp.eq.s32.totalorder %v318_v33, %v105_v50  ;;  %v345_v55 = vcvt.f32.s32 %v344_v5  ;;  %v360_v44 = vcvt.f32.s32 %v359_v56  ;;  %vm486_vm12 = vcmp.eq.s32.totalorder %v333_v4, %v106_v47 }
 0x1c0   :  { %v1816_v62 = vsel %vm485_vm11, 1.0, %v2245_v17  ;;  %v1817_v34 = vsel %vm486_vm12, 1.0, %v2245_v17  ;;  %v194_v33 = vmul.f32 1.442695, %v169_v23  ;;  %v437_v4 = vshll.u32 %v436_v51, 16 }
 0x1c1   :  { %v348_v24 = vadd.s32 %v347_v11, %v345_v55  ;;  %v2124_v26 = vpack.i.bf16 %v1816_v62, %v1815_v7  ;;  %v363_v15 = vadd.s32 %v362_v12, %v360_v44  ;;  %v113_v55 = vld [vmem:[%s3662_s2 + $0x48] sm:$0xff]  ;;  %v452_v44 = vshll.u32 %v451_v36, 16 }
 0x1c2   :  { %v2675_v3 = vpop.xlane.xlu1 %373  ;;  %v389_v29 = vpop.xlane.xlu0 %388  ;;  %v481_v12 = vcvt.f32.s32 %v2603_v10  ;;  %v116_v10 = vld [vmem:[%s3662_s2 + $0x60] sm:$0xff] }
 0x1c3   :  { %vm487_vm13 = vcmp.eq.s32.totalorder %v348_v24, %v107_v63  ;;  %v390_v31 = vcvt.f32.s32 %v389_v29  ;;  %2125 = vperm.xlu0 %2123, %v2124_v26   ;;  %vm488_vm14 = vcmp.eq.s32.totalorder %v363_v15, %v108_v21 }
 0x1c4   :  { %v1818_v9 = vsel %vm487_vm13, 1.0, %v2245_v17  ;;  %v1819_v49 = vsel %vm488_vm14, 1.0, %v2245_v17  ;;  %v482_v24 = vshll.u32 %v481_v12, 16 }
 0x1c5   :  { %v2130_v43 = vpack.i.bf16 %v1818_v9, %v1817_v34  ;;  %v393_v20 = vadd.s32 %v392_v19, %v390_v31 }
 0x1c6   :  { %v404_v22 = vpop.xlane.xlu1 %403  ;;  %v419_v53 = vpop.xlane.xlu0 %418 }
 0x1c7   :  { %v405_v35 = vcvt.f32.s32 %v404_v22  ;;  %2131 = vperm.xlu1 %2129, %v2130_v43   ;;  %v420_v61 = vcvt.f32.s32 %v419_v53  ;;  %vm490_vm15 = vcmp.eq.s32.totalorder %v393_v20, %v110_v48 }
 0x1c8   :  { %v1821_v39 = vsel %vm490_vm15, 1.0, %v2245_v17 }
 0x1c9   :  { %v408_v60 = vadd.s32 %v407_v57, %v405_v35  ;;  %v423_v42 = vadd.s32 %v422_v37, %v420_v61  ;;  %v376_v37 = vcvt.f32.s32 %v2571_v2 }
 0x1ca   :  { %v434_v58 = vpop.xlane.xlu1 %433  ;;  %v449_v14 = vpop.xlane.xlu0 %448 }
 0x1cb   :  { %691 = vperm.xlu1 %2129, %v1819_v49   ;;  %v435_v50 = vcvt.f32.s32 %v434_v58  ;;  %vm491_vm1 = vcmp.eq.s32.totalorder %v408_v60, %v111_v13  ;;  %v450_v56 = vcvt.f32.s32 %v449_v14  ;;  %vm492_vm2 = vcmp.eq.s32.totalorder %v423_v42, %v112_v25 }
 0x1cc   :  { %v1822_v27 = vsel %vm491_vm1, 1.0, %v2245_v17  ;;  %v1823_v40 = vsel %vm492_vm2, 1.0, %v2245_v17  ;;  %v377_v36 = vshll.u32 %v376_v37, 16 }
 0x1cd   :  { %v438_v5 = vadd.s32 %v437_v4, %v435_v50  ;;  %v453_v7 = vadd.s32 %v452_v44, %v450_v56  ;;  %v375_v50 = vcvt.f32.s32 %v2675_v3  ;;  %v109_v44 = vld [vmem:[%s3662_s2 + $0x28] sm:$0xff] }
 0x1ce   :  { %v2694_v16 = vpop.xlane.xlu1 %463  ;;  %v479_v11 = vpop.xlane.xlu0 %478 }
 0x1cf   :  { %701 = vperm.xlu1 %2129, %v1821_v39   ;;  %v480_v62 = vcvt.f32.s32 %v479_v11  ;;  %vm493_vm3 = vcmp.eq.s32.totalorder %v438_v5, %v113_v55  ;;  %vm494_vm4 = vcmp.eq.s32.totalorder %v453_v7, %v114_v1  ;;  %v378_v2 = vadd.s32 %v377_v36, %v375_v50 }
 0x1d0   :  { %v1824_v29 = vsel %vm493_vm3, 1.0, %v2245_v17  ;;  %v1825_v21 = vsel %vm494_vm4, 1.0, %v2245_v17  ;;  %v465_v11 = vcvt.f32.s32 %v2694_v16 }
 0x1d1   :  { %v483_v15 = vadd.s32 %v482_v24, %v480_v62  ;;  %vm489_vm14 = vcmp.eq.s32.totalorder %v378_v2, %v109_v44  ;;  %v115_v62 = vld [vmem:[%s3662_s2 + $0x58] sm:$0xff] }
 0x1d2   :  { %v222_v47 = vpop.xlane.xlu1 %221  ;;  %v1820_v1 = vsel %vm489_vm14, 1.0, %v2245_v17 }
 0x1d3   :  { %2175 = vrcp.f32 %v222_v47  ;;  %706 = vperm.xlu1 %2129, %v1822_v27   ;;  %vm496_vm5 = vcmp.eq.s32.totalorder %v483_v15, %v116_v10  ;;  %v466_v27 = vcvt.f32.s32 %v2605_v46 }
 0x1d4   :  { %2177 = vpow2.f32 %v194_v33  ;;  %v1827_v20 = vsel %vm496_vm5, 1.0, %v2245_v17 }
 0x1d5   :  { %v467_v46 = vshll.u32 %v466_v27, 16 }
 0x1d6   :  { %v225_v63 = vpop.xlane.xlu1 %224 }
 0x1d7   :  { %2179 = vrcp.f32 %v225_v63  ;;  %711 = vperm.xlu1 %2129, %v1823_v40   ;;  %v468_v16 = vadd.s32 %v467_v46, %v465_v11 }
 0x1d9   :  { %vm495_vm4 = vcmp.eq.s32.totalorder %v468_v16, %v115_v62 }
 0x1da   :  { %v228_v26 = vpop.xlane.xlu1 %227 }
 0x1db   :  { %2181 = vrcp.f32 %v228_v26  ;;  %716 = vperm.xlu1 %2129, %v1824_v29  }
 0x1dd   :  { %v2714_v31 = vpop.eup %2175 }
 0x1de   :  { %v2178_v34 = vpop.eup %2177  ;;  %v231_v9 = vpop.xlane.xlu1 %230  ;;  %v531_v19 = vmul.f32 15.0, %v2714_v31 }
 0x1df   :  { %2183 = vrcp.f32 %v231_v9  ;;  %721 = vperm.xlu1 %2129, %v1825_v21   ;;  %v232_v22 = vsel %vm117_vm0, %v2178_v34, 0.0 }
 0x1e0   :  { %v544_v6 = vceil.f32 %v531_v19 }
 0x1e1   :  { %v2718_v43 = vpop.eup %2179 }
 0x1e2   :  { %233 = vadd.xlane.f32.xlu0 %v232_v22  ;;  %v532_v35 = vmul.f32 15.0, %v2718_v43  ;;  %v2074_v53 = vtrunc.f32 %v544_v6 }
 0x1e3   :  { %731 = vperm.xlu1 %2129, %v1827_v20  }
 0x1e4   :  { %v545_v48 = vceil.f32 %v532_v35  ;;  %v2075_v41 = vcvt.f32.s32 %v2074_v53 }
 0x1e5   :  { %v2723_v57 = vpop.eup %2181 }
 0x1e6   :  { %v2076_v58 = vtrunc.f32 %v545_v48  ;;  %v1836_v49 = vadd.s32 4294967295, %v2075_v41  ;;  %v533_v60 = vmul.f32 15.0, %v2723_v57 }
 0x1e8   :  { %v2077_v61 = vcvt.f32.s32 %v2076_v58  ;;  %vm591_vm6 = vcmp.gt.s32.totalorder %v1836_v49, 0  ;;  %v546_v23 = vceil.f32 %v533_v60 }
 0x1e9   :  { %v2726_v13 = vpop.eup %2183  ;;  %v592_v51 = vsel %vm591_vm6, %v1836_v49, 0  ;;  %vm2246_vm6 = vmmov 0  }
 0x1ea   :  { %v1837_v14 = vadd.s32 4294967295, %v2077_v61  ;;  %vm617_vm0 = vcmp.lt.s32.totalorder %v592_v51, 14  ;;  %v534_v39 = vmul.f32 15.0, %v2726_v13  ;;  %v2078_v42 = vtrunc.f32 %v546_v23  ;;  %1990 = vmatprep.mubr.msk.f32.mxu0 %vm2246_vm6, %v2245_v17 }
 0x1eb   :  { %v618_v47 = vsel %vm617_vm0, %v592_v51, 14  ;;  %vm668_vm0 = vcmp.eq.s32.totalorder %v2371_v28, 2 }
 0x1ec   :  { %vm593_vm7 = vcmp.gt.s32.totalorder %v1837_v14, 0  ;;  %v547_v33 = vceil.f32 %v534_v39  ;;  %v2079_v25 = vcvt.f32.s32 %v2078_v42  ;;  %vm635_vm9 = vcmp.eq.s32.totalorder %v2371_v28, %v618_v47 }
 0x1ed   :  { %v594_v4 = vsel %vm593_vm7, %v1837_v14, 0  ;;  %vm667_vm7 = vcmp.eq.s32.totalorder %v2371_v28, 1 }
 0x1ee   :  { %vm619_vm8 = vcmp.lt.s32.totalorder %v594_v4, 14  ;;  %v2080_v5 = vtrunc.f32 %v547_v33  ;;  %v1838_v56 = vadd.s32 4294967295, %v2079_v25 }
 0x1ef   :  { %v620_v55 = vsel %vm619_vm8, %v594_v4, 14  ;;  %vm666_vm8 = vcmp.eq.s32.totalorder %v2371_v28, 0 }
 0x1f0   :  { %vm636_vm10 = vcmp.eq.s32.totalorder %v2371_v28, %v620_v55  ;;  %v2081_v3 = vcvt.f32.s32 %v2080_v5  ;;  %vm595_vm11 = vcmp.gt.s32.totalorder %v1838_v56, 0 }
 0x1f1   :  { %vm2035_vm12 = vmpackc.low %vm636_vm10, %vm635_vm9  ;;  %v596_v12 = vsel %vm595_vm11, %v1838_v56, 0 }
 0x1f2   :  { %2036 = vmatpush3.bf16.msk.msra.mxu0 %vm2035_vm12, %v2244_v45  ;;  %v1839_v63 = vadd.s32 4294967295, %v2081_v3  ;;  %vm621_vm13 = vcmp.lt.s32.totalorder %v596_v12, 14  ;;  %vm805_vm12 = vcmask 850944  }
 0x1f3   :  { %2037 = vmatprep.subr.bf16.mxu0 %v2242_v38  ;;  %v622_v7 = vsel %vm621_vm13, %v596_v12, 14  ;;  %v1826_v38 = vsel %vm495_vm4, 1.0, %v2245_v17 }
 0x1f4   :  { %vm597_vm15 = vcmp.gt.s32.totalorder %v1839_v63, 0  ;;  %vm637_vm2 = vcmp.eq.s32.totalorder %v2371_v28, %v622_v7 }
 0x1f5   :  { %v598_v40 = vsel %vm597_vm15, %v1839_v63, 0 }
 0x1f6   :  { %vm623_vm1 = vcmp.lt.s32.totalorder %v598_v40, 14 }
 0x1f7   :  { %v624_v24 = vsel %vm623_vm1, %v598_v40, 14 }
 0x1f8   :  { %696 = vperm.xlu0 %2123, %v1820_v1   ;;  %vm638_vm3 = vcmp.eq.s32.totalorder %v2371_v28, %v624_v24 }
 0x1f9   :  { %vm2038_vm5 = vmpackc.low %vm638_vm3, %vm637_vm2 }
 0x1fa   :  { %2039 = vmatpush3.bf16.msk.msra.mxu0 %vm2038_vm5, %v2244_v45 }
 0x1fb   :  { %1988 = vmatprep.subr.mxu0 %v2245_v17 }
 0x1fc   :  { %726 = vperm.xlu0 %2123, %v1826_v38  }
 0x242   :  { %v2126_v26 = vpop.permute.xlu0 %2125 }
 0x243   :  { %v2128_v29 = vunpack.i.h.bf16 %v2126_v26  ;;  %v2127_v15 = vunpack.i.l.bf16 %v2126_v26 }
 0x245   :  { %v735_v45 = vsel %vm668_vm0, %v2128_v29, 0.0  ;;  %v734_v10 = vsel %vm668_vm0, %v2127_v15, 0.0  ;;  %v2247_v29 = vmov 1.0   ;;  %v103_v15 = vld [vmem:[%s3663_s3] sm:$0xff] }
 0x246   :  { %v2132_v34 = vpop.permute.xlu1 %2131  ;;  %v747_v17 = vsel %vm667_vm7, %v2614_v8, %v734_v10  ;;  %v748_v19 = vsel %vm667_vm7, %v2616_v54, %v735_v45 }
 0x247   :  { %v2133_v9 = vunpack.i.l.bf16 %v2132_v34  ;;  %v760_v21 = vsel %vm666_vm8, 1.0, %v747_v17  ;;  %v2134_v6 = vunpack.i.h.bf16 %v2132_v34  ;;  %v761_v35 = vsel %vm666_vm8, 1.0, %v748_v19 }
 0x248   :  { %773 = vxpose.xlu0.b32.start [1/13] (short) (narrow) %v760_v21, 8 }
 0x249   :  { %v736_v22 = vsel %vm668_vm0, %v2133_v9, 0.0  ;;  %v737_v53 = vsel %vm668_vm0, %v2134_v6, 0.0 }
 0x24a   :  { %v692_v20 = vpop.permute.xlu1 %691  ;;  %v749_v8 = vsel %vm667_vm7, %v2621_v0, %v736_v22  ;;  %v750_v41 = vsel %vm667_vm7, %v2623_v18, %v737_v53 }
 0x24b   :  { %v762_v54 = vsel %vm666_vm8, 1.0, %v749_v8  ;;  %v738_v58 = vsel %vm668_vm0, %v692_v20, 0.0  ;;  %v763_v60 = vsel %vm666_vm8, 1.0, %v750_v41 }
 0x24c   :  { %774 = vxpose.xlu0.b32.cont [2/13] (short) (narrow) %v761_v35, 8  ;;  %v751_v0 = vsel %vm667_vm7, %v2627_v30, %v738_v58 }
 0x24d   :  { %v764_v23 = vsel %vm666_vm8, 1.0, %v751_v0 }
 0x24e   :  { %v702_v48 = vpop.permute.xlu1 %701 }
 0x250   :  { %775 = vxpose.xlu0.b32.cont [3/13] (short) (narrow) %v762_v54, 8 }
 0x252   :  { %v707_v49 = vpop.permute.xlu1 %706 }
 0x254   :  { %776 = vxpose.xlu0.b32.cont [4/13] (short) (narrow) %v763_v60, 8 }
 0x256   :  { %v712_v61 = vpop.permute.xlu1 %711 }
 0x257   :  { %v742_v7 = vsel %vm668_vm0, %v712_v61, 0.0 }
 0x258   :  { %777 = vxpose.xlu0.b32.cont [5/13] (short) (narrow) %v764_v23, 8  ;;  %v755_v1 = vsel %vm667_vm7, %v2714_v31, %v742_v7 }
 0x259   :  { %v768_v38 = vsel %vm666_vm8, 1.0, %v755_v1 }
 0x25a   :  { %v717_v37 = vpop.permute.xlu1 %716 }
 0x25b   :  { %v743_v18 = vsel %vm668_vm0, %v717_v37, 0.0 }
 0x25c   :  { %v756_v51 = vsel %vm667_vm7, %v2718_v43, %v743_v18  ;;  %v740_v43 = vsel %vm668_vm0, %v702_v48, 0.0 }
 0x25d   :  { %v769_v14 = vsel %vm666_vm8, 1.0, %v756_v51  ;;  %v753_v56 = vsel %vm667_vm7, %v2633_v59, %v740_v43 }
 0x25e   :  { %v722_v39 = vpop.permute.xlu1 %721  ;;  %v766_v46 = vsel %vm666_vm8, 1.0, %v753_v56 }
 0x25f   :  { %v744_v30 = vsel %vm668_vm0, %v722_v39, 0.0 }
 0x260   :  { %v757_v42 = vsel %vm667_vm7, %v2723_v57, %v744_v30 }
 0x261   :  { %v770_v50 = vsel %vm666_vm8, 1.0, %v757_v42 }
 0x262   :  { %v732_v25 = vpop.permute.xlu1 %731 }
 0x263   :  { %v746_v57 = vsel %vm668_vm0, %v732_v25, 0.0 }
 0x26f   :  { %v234_v33 = vpop.xlane.xlu0 %233 }
 0x270   :  { %2185 = vrcp.f32 %v234_v33 }
 0x277   :  { %v697_v36 = vpop.permute.xlu0 %696 }
 0x278   :  { %v739_v4 = vsel %vm668_vm0, %v697_v36, 0.0 }
 0x279   :  { %v752_v47 = vsel %vm667_vm7, %v2629_v32, %v739_v4  ;;  %v741_v32 = vsel %vm668_vm0, %v707_v49, 0.0 }
 0x27a   :  { %v2186_v27 = vpop.eup %2185  ;;  %v765_v5 = vsel %vm666_vm8, 1.0, %v752_v47  ;;  %v754_v16 = vsel %vm667_vm7, %v2635_v52, %v741_v32 }
 0x27b   :  { %v727_v2 = vpop.permute.xlu0 %726  ;;  %778 = vxpose.xlu0.b32.cont [6/13] (short) (narrow) %v765_v5, 8  ;;  %v535_v11 = vmul.f32 15.0, %v2186_v27  ;;  %v759_v55 = vsel %vm667_vm7, %v2186_v27, %v746_v57 }
 0x27c   :  { %v745_v3 = vsel %vm668_vm0, %v727_v2, 0.0  ;;  %v772_v44 = vsel %vm666_vm8, 1.0, %v759_v55 }
 0x27d   :  { %v758_v12 = vsel %vm667_vm7, %v2726_v13, %v745_v3  ;;  %v548_v59 = vceil.f32 %v535_v11  ;;  %v767_v13 = vsel %vm666_vm8, 1.0, %v754_v16 }
 0x27e   :  { %v771_v63 = vsel %vm666_vm8, 1.0, %v758_v12 }
 0x27f   :  { %779 = vxpose.xlu0.b32.cont [7/13] (short) (narrow) %v766_v46, 8  ;;  %v2082_v40 = vtrunc.f32 %v548_v59 }
 0x281   :  { %v2083_v62 = vcvt.f32.s32 %v2082_v40 }
 0x283   :  { %780 = vxpose.xlu0.b32.cont [8/13] (short) (narrow) %v767_v13, 8  ;;  %v1840_v24 = vadd.s32 4294967295, %v2083_v62 }
 0x285   :  { %vm599_vm9 = vcmp.gt.s32.totalorder %v1840_v24, 0 }
 0x286   :  { %v600_v52 = vsel %vm599_vm9, %v1840_v24, 0 }
 0x287   :  { %781 = vxpose.xlu0.b32.cont [9/13] (short) (narrow) %v768_v38, 8  ;;  %vm625_vm10 = vcmp.lt.s32.totalorder %v600_v52, 14 }
 0x288   :  { %v626_v26 = vsel %vm625_vm10, %v600_v52, 14 }
 0x289   :  { %vm639_vm11 = vcmp.eq.s32.totalorder %v2371_v28, %v626_v26 }
 0x28a   :  { %1989 = vmatpush3.msk.msra.mxu0 %vm639_vm11, %v2247_v29 }
 0x28b   :  { %782 = vxpose.xlu0.b32.cont [10/13] (short) (narrow) %v769_v14, 8 }
 0x28f   :  { %783 = vxpose.xlu0.b32.cont [11/13] (short) (narrow) %v770_v50, 8 }
 0x293   :  { %784 = vxpose.xlu0.b32.cont [12/13] (short) (narrow) %v771_v63, 8 }
 0x297   :  { %785 = vxpose.xlu0.b32.end [13/13] (short) (narrow) %v772_v44, 8 }
 0x2e7   :  { %v789_v31 = vpop.trf.xlu0 }
 0x2e8   :  { %1991 = vmatmul.mubr.msk.f32.vlgmr.msra.gmra.mrb[0].mxu0 %vm805_vm12, %v789_v31 }
 0x3bb   :  { %v875_v45 = vpop.f32.mrb[0].mxu0 }
 0x3bc   :  { %v879_v10 = vadd.f32 %v875_v45, %v103_v15  ;;  %v1992_v34 = vpop.f32.mrb[1].mxu0 }
 0x3be   :  { %880 = vst [vmem:[%s3663_s3] sm:$0xff] %v879_v10 }
 0x3bf PF:  { %p1869_p1 = scmp.ge.s32.totalorder %s3660_s0, 104 }
 0x3c1   :  { %884 = sbr.rel (%p1869_p1) target bundleno = 1893 (0x765), region = 21 }
 0x3c8   :  { %v886_v28 = vlaneseq  ;;  %v2856_v17 = vstv %s3660_s0  ;;  %v928_v21 = vld [vmem:[%s3661_s1] sm:$0xff]  ;;  %vm1007_vm13 = vcmask 80896   ;;  %v930_v6 = vld [vmem:[%s3661_s1 + $0x10] sm:$0xff]  ;;  %v929_v20 = vld [vmem:[%s3661_s1 + $0x8] sm:$0xff] }
 0x3c9   :  { %v931_v53 = vld [vmem:[%s3661_s1 + $0x18] sm:$0xff]  ;;  %v932_v60 = vld [vmem:[%s3661_s1 + $0x20] sm:$0xff]  ;;  %v933_v37 = vld [vmem:[%s3661_s1 + $0x28] sm:$0xff] }
 0x3ca   :  { %v2859_v9 = vshrl.u32 %v886_v28, 7  ;;  %v934_v39 = vld [vmem:[%s3661_s1 + $0x30] sm:$0xff]  ;;  %v935_v33 = vld [vmem:[%s3661_s1 + $0x38] sm:$0xff]  ;;  %v936_v47 = vld [vmem:[%s3661_s1 + $0x40] sm:$0xff]  ;;  %v3054_v24 = vand.u32 127, %v886_v28 }
 0x3cb   :  { %v937_v56 = vld [vmem:[%s3661_s1 + $0x48] sm:$0xff]  ;;  %v938_v32 = vld [vmem:[%s3661_s1 + $0x50] sm:$0xff]  ;;  %v939_v59 = vld [vmem:[%s3661_s1 + $0x58] sm:$0xff] }
 0x3cc   :  { %vm915_vm14 = vcmp.lt.s32.totalorder %v2859_v9, %v2856_v17  ;;  %v2867_v19 = vadd.s32 16, %v2859_v9  ;;  %v2873_v22 = vadd.s32 8, %v2859_v9  ;;  %v2879_v35 = vadd.s32 24, %v2859_v9  ;;  %v940_v16 = vld [vmem:[%s3661_s1 + $0x60] sm:$0xff] }
 0x3cd   :  { %v2884_v8 = vsel %vm915_vm14, %v928_v21, 0.0  ;;  %v2890_v48 = vadd.s32 32, %v2859_v9  ;;  %v2893_v54 = vadd.s32 40, %v2859_v9  ;;  %v2933_v18 = vadd.s32 48, %v2859_v9 }
 0x3ce   :  { %v1008_v41 = vsel %vm1007_vm13, %v2884_v8, -inf  ;;  %vm917_vm15 = vcmp.lt.s32.totalorder %v2867_v19, %v2856_v17  ;;  %vm916_vm1 = vcmp.lt.s32.totalorder %v2873_v22, %v2856_v17  ;;  %vm918_vm2 = vcmp.lt.s32.totalorder %v2879_v35, %v2856_v17  ;;  %v987_v35 = vld [vmem:[%s3662_s2 + $0x30] sm:$0xff] }
 0x3cf   :  { %3677 = vst [vmem:[#allocation4_spill] sm:$0xff] %v2893_v54  ;;  %1009 = vmax.xlane.f32.xlu0 %v1008_v41  ;;  %v2906_v58 = vsel %vm917_vm15, %v930_v6, 0.0  ;;  %v2911_v49 = vsel %vm916_vm1, %v929_v20, 0.0  ;;  %v2923_v23 = vsel %vm918_vm2, %v931_v53, 0.0  ;;  %vm919_vm3 = vcmp.lt.s32.totalorder %v2890_v48, %v2856_v17  ;;  %3678 = vst [vmem:[#allocation5_spill] sm:$0xff] %v2933_v18  ;;  %v986_v48 = vld [vmem:[%s3662_s2 + $0x28] sm:$0xff] }
 0x3d0   :  { %v1014_v0 = vsel %vm1007_vm13, %v2906_v58, -inf  ;;  %v1011_v61 = vsel %vm1007_vm13, %v2911_v49, -inf  ;;  %vm920_vm4 = vcmp.lt.s32.totalorder %v2893_v54, %v2856_v17  ;;  %v1017_v51 = vsel %vm1007_vm13, %v2923_v23, -inf }
 0x3d1   :  { %1015 = vmax.xlane.f32.xlu1 %v1014_v0  ;;  %v2940_v14 = vsel %vm919_vm3, %v932_v60, 0.0  ;;  %v2948_v30 = vsel %vm920_vm4, %v933_v37, 0.0  ;;  %vm921_vm5 = vcmp.lt.s32.totalorder %v2933_v18, %v2856_v17  ;;  %v2953_v42 = vadd.s32 56, %v2859_v9 }
 0x3d2   :  { %v1020_v50 = vsel %vm1007_vm13, %v2940_v14, -inf  ;;  %v2961_v25 = vadd.s32 64, %v2859_v9  ;;  %v2964_v36 = vadd.s32 72, %v2859_v9  ;;  %v2969_v43 = vsel %vm921_vm5, %v934_v39, 0.0 }
 0x3d3   :  { %1012 = vmax.xlane.f32.xlu0 %v1011_v61  ;;  %3679 = vst [vmem:[#allocation6_spill] sm:$0xff] %v2953_v42  ;;  %vm3676_vm6 = vcmp.lt.s32.totalorder %v2953_v42, %v2856_v17  ;;  %v1023_v4 = vsel %vm1007_vm13, %v2948_v30, -inf  ;;  %v2981_v27 = vadd.s32 80, %v2859_v9  ;;  %v1026_v5 = vsel %vm1007_vm13, %v2969_v43, -inf }
 0x3d4   :  { %3680 = vst [vmem:[#allocation7_spill] sm:$0xff] %v2961_v25  ;;  %3681 = vst [vmem:[#allocation8_spill] sm:$0xff] %v2964_v36  ;;  %vm3674_vm0 = vcmp.lt.s32.totalorder %v2961_v25, %v2856_v17  ;;  %v2986_v57 = vsel %vm3676_vm6, %v935_v33, 0.0  ;;  %vm924_vm7 = vcmp.lt.s32.totalorder %v2964_v36, %v2856_v17  ;;  %v2996_v2 = vadd.s32 88, %v2859_v9 }
 0x3d5   :  { %1018 = vmax.xlane.f32.xlu1 %v1017_v51  ;;  %3682 = vst [vmem:[#allocation9_spill] sm:$0xff] %v2981_v27  ;;  %v3001_v11 = vsel %vm3674_vm0, %v936_v47, 0.0  ;;  %v1029_v55 = vsel %vm1007_vm13, %v2986_v57, -inf  ;;  %vm3673_vm8 = vcmp.lt.s32.totalorder %v2981_v27, %v2856_v17  ;;  %v3011_v3 = vadd.s32 96, %v2859_v9  ;;  %v983_v9 = vld [vmem:[%s3662_s2 + $0x10] sm:$0xff] }
 0x3d6   :  { %3683 = vst [vmem:[#allocation10_spill] sm:$0xff] %v2996_v2  ;;  %v3016_v44 = vsel %vm924_vm7, %v937_v56, 0.0  ;;  %v1032_v12 = vsel %vm1007_vm13, %v3001_v11, -inf  ;;  %vm3675_vm9 = vcmp.lt.s32.totalorder %v2996_v2, %v2856_v17  ;;  %v3028_v46 = vsel %vm3673_vm8, %v938_v32, 0.0 }
 0x3d7   :  { %1021 = vmax.xlane.f32.xlu0 %v1020_v50  ;;  %3684 = vst [vmem:[#allocation11_spill] sm:$0xff] %v3011_v3  ;;  %v1035_v63 = vsel %vm1007_vm13, %v3016_v44, -inf  ;;  %vm3664_vm10 = vcmp.lt.s32.totalorder %v3011_v3, %v2856_v17  ;;  %v3040_v40 = vsel %vm3675_vm9, %v939_v59, 0.0  ;;  %v1038_v7 = vsel %vm1007_vm13, %v3028_v46, -inf }
 0x3d8   :  { %v3047_v62 = vsel %vm3664_vm10, %v940_v16, 0.0  ;;  %v1041_v13 = vsel %vm1007_vm13, %v3040_v40, -inf }
 0x3d9   :  { %1024 = vmax.xlane.f32.xlu1 %v1023_v4  ;;  %v1044_v1 = vsel %vm1007_vm13, %v3047_v62, -inf }
 0x3db   :  { %1027 = vmax.xlane.f32.xlu0 %v1026_v5 }
 0x3dd   :  { %1030 = vmax.xlane.f32.xlu1 %v1029_v55 }
 0x3df   :  { %1033 = vmax.xlane.f32.xlu0 %v1032_v12 }
 0x3e1   :  { %1036 = vmax.xlane.f32.xlu1 %v1035_v63 }
 0x3e3   :  { %1039 = vmax.xlane.f32.xlu0 %v1038_v7 }
 0x3e5   :  { %1042 = vmax.xlane.f32.xlu1 %v1041_v13 }
 0x3e7   :  { %1045 = vmax.xlane.f32.xlu0 %v1044_v1 }
 0x45c   :  { %v1010_v38 = vpop.xlane.xlu0 %1009 }
 0x45d   :  { %vm1153_vm11 = vcmp.eq.f32.partialorder %v2884_v8, %v1010_v38  ;;  %v1047_v5 = vsub.f32 %v2884_v8, %v1010_v38 }
 0x45e   :  { %v1166_v52 = vsel %vm1153_vm11, %v3054_v24, 2147483647  ;;  %v3058_v26 = vpop.xlane.xlu1 %1015 }
 0x45f   :  { %vm1155_vm12 = vcmp.eq.f32.partialorder %v2906_v58, %v3058_v26  ;;  %v3063_v29 = vsel %vm1007_vm13, %v1166_v52, 2147483647  ;;  %v1060_v38 = vmul.f32 1.442695, %v1047_v5 }
 0x460   :  { %v1168_v31 = vsel %vm1155_vm12, %v3054_v24, 2147483647  ;;  %v1013_v15 = vpop.xlane.xlu0 %1012  ;;  %v1181_v45 = vshra.s32 %v3063_v29, 16 }
 0x461   :  { %vm1154_vm10 = vcmp.eq.f32.partialorder %v2911_v49, %v1013_v15  ;;  %v3074_v21 = vsel %vm1007_vm13, %v1168_v31, 2147483647  ;;  %v1048_v63 = vsub.f32 %v2911_v49, %v1013_v15  ;;  %2189 = vpow2.f32 %v1060_v38 }
 0x462   :  { %v1167_v10 = vsel %vm1154_vm10, %v3054_v24, 2147483647  ;;  %v3069_v34 = vcvt.s32.f32 %v1181_v45  ;;  %v3071_v28 = vpop.xlane.xlu1 %1018  ;;  %v1211_v53 = vshra.s32 %v3074_v21, 16  ;;  %v1210_v54 = vand.u32 65535, %v3074_v21 }
 0x463   :  { %vm1156_vm11 = vcmp.eq.f32.partialorder %v2923_v23, %v3071_v28  ;;  %v3084_v41 = vsel %vm1007_vm13, %v1167_v10, 2147483647  ;;  %v1049_v10 = vsub.f32 %v2906_v58, %v3058_v26 }
 0x464   :  { %1184 = vmin.xlane.f32.xlu1 %v3069_v34  ;;  %v1169_v6 = vsel %vm1156_vm11, %v3054_v24, 2147483647  ;;  %v3080_v20 = vpop.xlane.xlu0 %1021  ;;  %v3089_v0 = vcvt.s32.f32 %v1211_v53  ;;  %v1196_v37 = vshra.s32 %v3084_v41, 16 }
 0x465   :  { %vm1157_vm10 = vcmp.eq.f32.partialorder %v2940_v14, %v3080_v20  ;;  %v3095_v51 = vsel %vm1007_vm13, %v1169_v6, 2147483647  ;;  %v1062_v6 = vmul.f32 1.442695, %v1048_v63  ;;  %v1064_v63 = vmul.f32 1.442695, %v1049_v10 }
 0x466   :  { %v1170_v60 = vsel %vm1157_vm10, %v3054_v24, 2147483647  ;;  %v3091_v61 = vpop.xlane.xlu1 %1024  ;;  %v3101_v50 = vcvt.s32.f32 %v1196_v37  ;;  %v1226_v4 = vshra.s32 %v3095_v51, 16  ;;  %v1225_v21 = vand.u32 65535, %v3095_v51 }
 0x467   :  { %vm1158_vm12 = vcmp.eq.f32.partialorder %v2948_v30, %v3091_v61  ;;  %v3107_v47 = vsel %vm1007_vm13, %v1170_v60, 2147483647  ;;  %2191 = vpow2.f32 %v1062_v6 }
 0x468   :  { %1214 = vmin.xlane.f32.xlu1 %v3089_v0  ;;  %v1171_v39 = vsel %vm1158_vm12, %v3054_v24, 2147483647  ;;  %v3103_v33 = vpop.xlane.xlu0 %1027  ;;  %1199 = vmin.xlane.f32.xlu0 %v3101_v50  ;;  %v3116_v32 = vcvt.s32.f32 %v1226_v4  ;;  %v1241_v12 = vshra.s32 %v3107_v47, 16  ;;  %2193 = vpow2.f32 %v1064_v63 }
 0x469   :  { %vm1159_vm11 = vcmp.eq.f32.partialorder %v2969_v43, %v3103_v33  ;;  %v3120_v59 = vsel %vm1007_vm13, %v1171_v39, 2147483647 }
 0x46a   :  { %v1172_v56 = vsel %vm1159_vm11, %v3054_v24, 2147483647  ;;  %v3114_v55 = vpop.xlane.xlu1 %1030  ;;  %v3126_v16 = vcvt.s32.f32 %v1241_v12  ;;  %v1256_v13 = vshra.s32 %v3120_v59, 16 }
 0x46b   :  { %vm1160_vm10 = vcmp.eq.f32.partialorder %v2986_v57, %v3114_v55  ;;  %v3132_v1 = vsel %vm1007_vm13, %v1172_v56, 2147483647 }
 0x46c   :  { %v1173_v8 = vsel %vm1160_vm10, %v3054_v24, 2147483647  ;;  %v3128_v7 = vpop.xlane.xlu0 %1033  ;;  %1229 = vmin.xlane.f32.xlu0 %v3116_v32  ;;  %1244 = vmin.xlane.f32.xlu1 %v3126_v16  ;;  %v3141_v31 = vcvt.s32.f32 %v1256_v13  ;;  %v1271_v15 = vshra.s32 %v3132_v1, 16  ;;  %v1270_v51 = vand.u32 65535, %v3132_v1 }
 0x46d   :  { %vm1161_vm12 = vcmp.eq.f32.partialorder %v3001_v11, %v3128_v7  ;;  %v3145_v45 = vsel %vm1007_vm13, %v1173_v8, 2147483647 }
 0x46e   :  { %v1174_v49 = vsel %vm1161_vm12, %v3054_v24, 2147483647  ;;  %v3139_v52 = vpop.xlane.xlu1 %1036  ;;  %v3152_v60 = vcvt.s32.f32 %v1271_v15  ;;  %v1286_v39 = vshra.s32 %v3145_v45, 16 }
 0x46f   :  { %vm1162_vm11 = vcmp.eq.f32.partialorder %v3016_v44, %v3139_v52  ;;  %v3158_v4 = vsel %vm1007_vm13, %v1174_v49, 2147483647 }
 0x470   :  { %v1175_v53 = vsel %vm1162_vm11, %v3054_v24, 2147483647  ;;  %v3154_v37 = vpop.xlane.xlu0 %1039  ;;  %1259 = vmin.xlane.f32.xlu0 %v3141_v31  ;;  %1274 = vmin.xlane.f32.xlu1 %v3152_v60  ;;  %v3167_v5 = vcvt.s32.f32 %v1286_v39  ;;  %v1301_v56 = vshra.s32 %v3158_v4, 16 }
 0x471   :  { %vm1163_vm10 = vcmp.eq.f32.partialorder %v3028_v46, %v3154_v37  ;;  %v3171_v12 = vsel %vm1007_vm13, %v1175_v53, 2147483647 }
 0x472   :  { %v1176_v58 = vsel %vm1163_vm10, %v3054_v24, 2147483647  ;;  %v3165_v26 = vpop.xlane.xlu1 %1042  ;;  %v3176_v13 = vcvt.s32.f32 %v1301_v56  ;;  %v1316_v49 = vshra.s32 %v3171_v12, 16 }
 0x473   :  { %vm1164_vm12 = vcmp.eq.f32.partialorder %v3040_v40, %v3165_v26  ;;  %v3182_v15 = vsel %vm1007_vm13, %v1176_v58, 2147483647 }
 0x474   :  { %v1177_v8 = vsel %vm1164_vm12, %v3054_v24, 2147483647  ;;  %v3178_v38 = vpop.xlane.xlu0 %1045  ;;  %1289 = vmin.xlane.f32.xlu0 %v3167_v5  ;;  %1304 = vmin.xlane.f32.xlu1 %v3176_v13  ;;  %v3189_v6 = vcvt.s32.f32 %v1316_v49  ;;  %v1331_v53 = vshra.s32 %v3182_v15, 16 }
 0x475   :  { %vm1165_vm11 = vcmp.eq.f32.partialorder %v3047_v62, %v3178_v38  ;;  %v3193_v39 = vsel %vm1007_vm13, %v1177_v8, 2147483647  ;;  %v2190_v8 = vpop.eup %2189 }
 0x476   :  { %v1178_v10 = vsel %vm1165_vm11, %v3054_v24, 2147483647  ;;  %v1346_v56 = vshra.s32 %v3193_v39, 16  ;;  %v3199_v3 = vcvt.s32.f32 %v1331_v53  ;;  %v2192_v2 = vpop.eup %2191 }
 0x477   :  { %v3197_v58 = vsel %vm1007_vm13, %v1178_v10, 2147483647  ;;  %v1089_v63 = vsel %vm1007_vm13, %v2192_v2, 0.0  ;;  %v1086_v10 = vsel %vm1007_vm13, %v2190_v8, 0.0  ;;  %v2194_v53 = vpop.eup %2193  ;;  %v1195_v8 = vand.u32 65535, %v3084_v41 }
 0x478   :  { %v1361_v27 = vshra.s32 %v3197_v58, 16  ;;  %1319 = vmin.xlane.f32.xlu0 %v3189_v6  ;;  %1334 = vmin.xlane.f32.xlu1 %v3199_v3  ;;  %v3204_v49 = vcvt.s32.f32 %v1346_v56  ;;  %v1092_v42 = vsel %vm1007_vm13, %v2194_v53, 0.0  ;;  %v2248_v56 = vmov 0.0|0.0  }
 0x479   :  { %2040 = vmatprep.subr.bf16.mxu0 %v2248_v56  ;;  %v1197_v53 = vcvt.s32.f32 %v1195_v8  ;;  %v1255_v8 = vand.u32 65535, %v3120_v59  ;;  %v1272_v59 = vcvt.s32.f32 %v1270_v51 }
 0x47a   :  { %v3206_v25 = vcvt.s32.f32 %v1361_v27  ;;  %v1180_v27 = vand.u32 65535, %v3063_v29 }
 0x47c   :  { %1349 = vmin.xlane.f32.xlu0 %v3204_v49  ;;  %1364 = vmin.xlane.f32.xlu1 %v3206_v25  ;;  %v1182_v18 = vcvt.s32.f32 %v1180_v27  ;;  %v1240_v27 = vand.u32 65535, %v3107_v47  ;;  %v1227_v47 = vcvt.s32.f32 %v1225_v21  ;;  %v1054_v21 = vsub.f32 %v2986_v57, %v3114_v55 }
 0x480   :  { %1090 = vadd.xlane.f32.xlu0 %v1089_v63  ;;  %1087 = vadd.xlane.f32.xlu1 %v1086_v10 }
 0x484   :  { %1093 = vadd.xlane.f32.xlu1 %v1092_v42  ;;  %v1212_v42 = vcvt.s32.f32 %v1210_v54  ;;  %v1051_v54 = vsub.f32 %v2940_v14, %v3080_v20 }
 0x486   :  { %v1068_v20 = vmul.f32 1.442695, %v1051_v54  ;;  %v1074_v54 = vmul.f32 1.442695, %v1054_v21 }
 0x4f1   :  { %v3215_v36 = vpop.xlane.xlu1 %1184 }
 0x4f2   :  { %vm1186_vm10 = vcmp.eq.f32.partialorder %v3069_v34, %v3215_v36 }
 0x4f3   :  { %v1187_v2 = vsel %vm1186_vm10, %v1182_v18, inf  ;;  %v1050_v18 = vsub.f32 %v2923_v23, %v3071_v28 }
 0x4f4   :  { %1188 = vmin.xlane.f32.xlu0 %v1187_v2  ;;  %v1242_v2 = vcvt.s32.f32 %v1240_v27 }
 0x4f5   :  { %v3221_v63 = vpop.xlane.xlu1 %1214  ;;  %v3225_v10 = vpop.xlane.xlu0 %1199  ;;  %v1066_v23 = vmul.f32 1.442695, %v1050_v18 }
 0x4f6   :  { %vm1216_vm12 = vcmp.eq.f32.partialorder %v3089_v0, %v3221_v63  ;;  %vm1201_vm11 = vcmp.eq.f32.partialorder %v3101_v50, %v3225_v10  ;;  %v1052_v50 = vsub.f32 %v2948_v30, %v3091_v61 }
 0x4f7   :  { %v1217_v29 = vsel %vm1216_vm12, %v1212_v42, inf  ;;  %v1202_v34 = vsel %vm1201_vm11, %v1197_v53, inf  ;;  %v1285_v53 = vand.u32 65535, %v3145_v45  ;;  %2195 = vpow2.f32 %v1066_v23 }
 0x4f8   :  { %1218 = vmin.xlane.f32.xlu0 %v1217_v29  ;;  %1203 = vmin.xlane.f32.xlu1 %v1202_v34  ;;  %v1257_v29 = vcvt.s32.f32 %v1255_v8  ;;  %2197 = vpow2.f32 %v1068_v20  ;;  %v1070_v27 = vmul.f32 1.442695, %v1052_v50  ;;  %v1055_v34 = vsub.f32 %v3001_v11, %v3128_v7 }
 0x4f9   :  { %v3235_v41 = vpop.xlane.xlu1 %1244  ;;  %v3237_v0 = vpop.xlane.xlu0 %1229 }
 0x4fa   :  { %vm1246_vm10 = vcmp.eq.f32.partialorder %v3126_v16, %v3235_v41  ;;  %vm1231_vm12 = vcmp.eq.f32.partialorder %v3116_v32, %v3237_v0  ;;  %v1300_v16 = vand.u32 65535, %v3158_v4  ;;  %v1053_v32 = vsub.f32 %v2969_v43, %v3103_v33 }
 0x4fb   :  { %v1247_v28 = vsel %vm1246_vm10, %v1242_v2, inf  ;;  %v1232_v14 = vsel %vm1231_vm12, %v1227_v47, inf  ;;  %v1287_v33 = vcvt.s32.f32 %v1285_v53  ;;  %2199 = vpow2.f32 %v1070_v27 }
 0x4fc   :  { %1248 = vmin.xlane.f32.xlu0 %v1247_v28  ;;  %1233 = vmin.xlane.f32.xlu1 %v1232_v14  ;;  %v1302_v43 = vcvt.s32.f32 %v1300_v16  ;;  %v1072_v18 = vmul.f32 1.442695, %v1053_v32  ;;  %v1056_v2 = vsub.f32 %v3016_v44, %v3139_v52  ;;  %v1345_v47 = vand.u32 65535, %v3193_v39 }
 0x4fd   :  { %v3247_v42 = vpop.xlane.xlu1 %1274  ;;  %v3249_v1 = vpop.xlane.xlu0 %1259  ;;  %v1076_v51 = vmul.f32 1.442695, %v1055_v34 }
 0x4fe   :  { %vm1276_vm11 = vcmp.eq.f32.partialorder %v3152_v60, %v3247_v42  ;;  %vm1261_vm10 = vcmp.eq.f32.partialorder %v3141_v31, %v3249_v1  ;;  %v1330_v60 = vand.u32 65535, %v3182_v15  ;;  %v1315_v31 = vand.u32 65535, %v3171_v12 }
 0x4ff   :  { %v1277_v30 = vsel %vm1276_vm11, %v1272_v59, inf  ;;  %v1262_v61 = vsel %vm1261_vm10, %v1257_v29, inf  ;;  %v1058_v12 = vsub.f32 %v3040_v40, %v3165_v26  ;;  %2201 = vpow2.f32 %v1072_v18 }
 0x500   :  { %1278 = vmin.xlane.f32.xlu0 %v1277_v30  ;;  %1263 = vmin.xlane.f32.xlu1 %v1262_v61  ;;  %v1332_v7 = vcvt.s32.f32 %v1330_v60  ;;  %2203 = vpow2.f32 %v1074_v54  ;;  %v1078_v52 = vmul.f32 1.442695, %v1056_v2  ;;  %v2249_v29 = vmov 0  }
 0x501   :  { %v3261_v45 = vpop.xlane.xlu1 %1304  ;;  %v3263_v4 = vpop.xlane.xlu0 %1289  ;;  %v1082_v8 = vmul.f32 1.442695, %v1058_v12  ;;  %2205 = vpow2.f32 %v1076_v51  ;;  %2187 = vset.pattern.permute.xlu1 %v2249_v29  ;;  %2188 = vset.pattern.permute.xlu0 %v2249_v29  ;;  %v981_v29 = vld [vmem:[%s3662_s2] sm:$0xff] }
 0x502   :  { %vm1306_vm12 = vcmp.eq.f32.partialorder %v3176_v13, %v3261_v45  ;;  %vm1291_vm11 = vcmp.eq.f32.partialorder %v3167_v5, %v3263_v4  ;;  %v1317_v13 = vcvt.s32.f32 %v1315_v31  ;;  %v1360_v5 = vand.u32 65535, %v3197_v58  ;;  %v2196_v26 = vpop.eup %2195 }
 0x503   :  { %v1307_v57 = vsel %vm1306_vm12, %v1302_v43, inf  ;;  %v1292_v55 = vsel %vm1291_vm11, %v1287_v33, inf  ;;  %v1057_v58 = vsub.f32 %v3028_v46, %v3154_v37  ;;  %v2198_v14 = vpop.eup %2197  ;;  %2207 = vpow2.f32 %v1078_v52 }
 0x504   :  { %1308 = vmin.xlane.f32.xlu0 %v1307_v57  ;;  %1293 = vmin.xlane.f32.xlu1 %v1292_v55  ;;  %v1362_v28 = vcvt.s32.f32 %v1360_v5  ;;  %2209 = vpow2.f32 %v1082_v8 }
 0x505   :  { %v3277_v15 = vpop.xlane.xlu1 %1334  ;;  %v3279_v11 = vpop.xlane.xlu0 %1319  ;;  %v1080_v37 = vmul.f32 1.442695, %v1057_v58 }
 0x506   :  { %vm1336_vm10 = vcmp.eq.f32.partialorder %v3199_v3, %v3277_v15  ;;  %vm1321_vm12 = vcmp.eq.f32.partialorder %v3189_v6, %v3279_v11  ;;  %v1347_v3 = vcvt.s32.f32 %v1345_v47  ;;  %v1059_v6 = vsub.f32 %v3047_v62, %v3178_v38  ;;  %v2200_v16 = vpop.eup %2199 }
 0x507   :  { %v1337_v44 = vsel %vm1336_vm10, %v1332_v7, inf  ;;  %v1322_v40 = vsel %vm1321_vm12, %v1317_v13, inf  ;;  %v1098_v38 = vsel %vm1007_vm13, %v2198_v14, 0.0  ;;  %v1101_v32 = vsel %vm1007_vm13, %v2200_v16, 0.0 }
 0x508   :  { %1338 = vmin.xlane.f32.xlu0 %v1337_v44  ;;  %1323 = vmin.xlane.f32.xlu1 %v1322_v40  ;;  %v1084_v62 = vmul.f32 1.442695, %v1059_v6  ;;  %v2250_v14 = vmov 1.0|1.0   ;;  %v1191_v6 = vcvt.f32.s32 %v3215_v36  ;;  %v1206_v16 = vcvt.f32.s32 %v3225_v10 }
 0x509   :  { %v3289_v39 = vpop.xlane.xlu1 %1364  ;;  %v3291_v23 = vpop.xlane.xlu0 %1349 }
 0x50a   :  { %vm1366_vm11 = vcmp.eq.f32.partialorder %v3206_v25, %v3289_v39  ;;  %vm1351_vm10 = vcmp.eq.f32.partialorder %v3204_v49, %v3291_v23  ;;  %v1095_v25 = vsel %vm1007_vm13, %v2196_v26, 0.0  ;;  %v2202_v49 = vpop.eup %2201  ;;  %v1207_v10 = vshll.u32 %v1206_v16, 16 }
 0x50b   :  { %v1367_v20 = vsel %vm1366_vm11, %v1362_v28, inf  ;;  %v1352_v46 = vsel %vm1351_vm10, %v1347_v3, inf  ;;  %v2204_v53 = vpop.eup %2203  ;;  %v1104_v30 = vsel %vm1007_vm13, %v2202_v49, 0.0 }
 0x50c   :  { %1368 = vmin.xlane.f32.xlu0 %v1367_v20  ;;  %1353 = vmin.xlane.f32.xlu1 %v1352_v46  ;;  %v2206_v61 = vpop.eup %2205  ;;  %v1107_v43 = vsel %vm1007_vm13, %v2204_v53, 0.0  ;;  %v1192_v46 = vshll.u32 %v1191_v6, 16  ;;  %v2251_v53 = vmov 0.0  }
 0x50d   :  { %v1088_v50 = vpop.xlane.xlu1 %1087  ;;  %v1091_v59 = vpop.xlane.xlu0 %1090  ;;  %v1110_v33 = vsel %vm1007_vm13, %v2206_v61, 0.0  ;;  %v3329_v36 = vsel %vm915_vm14, 1.0, %v2251_v53  ;;  %v3361_v22 = vsel %vm919_vm3, 1.0, %v2251_v53  ;;  %v3381_v19 = vsel %vm918_vm2, 1.0, %v2251_v53 }
 0x50e   :  { %2211 = vrcp.f32 %v1088_v50  ;;  %v2208_v27 = vpop.eup %2207 }
 0x50f   :  { %2213 = vrcp.f32 %v1091_v59  ;;  %v2210_v21 = vpop.eup %2209  ;;  %v1113_v55 = vsel %vm1007_vm13, %v2208_v27, 0.0 }
 0x510   :  { %1096 = vadd.xlane.f32.xlu0 %v1095_v25  ;;  %1099 = vadd.xlane.f32.xlu1 %v1098_v38  ;;  %2215 = vpow2.f32 %v1080_v37  ;;  %v1119_v54 = vsel %vm1007_vm13, %v2210_v21, 0.0  ;;  %v1221_v37 = vcvt.f32.s32 %v3221_v63  ;;  %v1251_v63 = vcvt.f32.s32 %v3235_v41 }
 0x511   :  { %2217 = vpow2.f32 %v1084_v62  ;;  %v1094_v59 = vpop.xlane.xlu1 %1093 }
 0x512   :  { %v1222_v38 = vshll.u32 %v1221_v37, 16  ;;  %2219 = vrcp.f32 %v1094_v59 }
 0x514   :  { %1102 = vadd.xlane.f32.xlu0 %v1101_v32  ;;  %1105 = vadd.xlane.f32.xlu1 %v1104_v30  ;;  %v1236_v32 = vcvt.f32.s32 %v3237_v0  ;;  %v1252_v0 = vshll.u32 %v1251_v63, 16 }
 0x518   :  { %v3305_v60 = vpop.eup %2211  ;;  %1108 = vadd.xlane.f32.xlu0 %v1107_v43  ;;  %1111 = vadd.xlane.f32.xlu1 %v1110_v33  ;;  %v982_v33 = vld [vmem:[%s3662_s2 + $0x8] sm:$0xff] }
 0x519   :  { %v3307_v31 = vpop.eup %2213  ;;  %v1413_v18 = vmul.f32 15.0, %v3305_v60 }
 0x51a   :  { %v1414_v34 = vmul.f32 15.0, %v3307_v31  ;;  %v2216_v57 = vpop.eup %2215 }
 0x51b   :  { %v1426_v2 = vceil.f32 %v1413_v18  ;;  %v2218_v12 = vpop.eup %2217  ;;  %v1116_v47 = vsel %vm1007_vm13, %v2216_v57, 0.0  ;;  %v1237_v18 = vshll.u32 %v1236_v32, 16  ;;  %v3396_v32 = vsel %vm920_vm4, 1.0, %v2251_v53 }
 0x51c   :  { %1114 = vadd.xlane.f32.xlu0 %v1113_v55  ;;  %1120 = vadd.xlane.f32.xlu1 %v1119_v54  ;;  %v1427_v7 = vceil.f32 %v1414_v34  ;;  %v1122_v51 = vsel %vm1007_vm13, %v2218_v12, 0.0  ;;  %v1266_v34 = vcvt.f32.s32 %v3249_v1  ;;  %v3346_v12 = vsel %vm916_vm1, 1.0, %v2251_v53  ;;  %v985_v1 = vld [vmem:[%s3662_s2 + $0x20] sm:$0xff] }
 0x51d   :  { %v2084_v13 = vtrunc.f32 %v1426_v2 }
 0x51e   :  { %v2086_v5 = vtrunc.f32 %v1427_v7  ;;  %v1281_v7 = vcvt.f32.s32 %v3247_v42  ;;  %v1267_v42 = vshll.u32 %v1266_v34, 16  ;;  %v988_v34 = vld [vmem:[%s3662_s2 + $0x38] sm:$0xff] }
 0x51f   :  { %v2085_v44 = vcvt.f32.s32 %v2084_v13  ;;  %v984_v13 = vld [vmem:[%s3662_s2 + $0x18] sm:$0xff] }
 0x520   :  { %1117 = vadd.xlane.f32.xlu0 %v1116_v47  ;;  %1123 = vadd.xlane.f32.xlu1 %v1122_v51  ;;  %v2087_v40 = vcvt.f32.s32 %v2086_v5 }
 0x521   :  { %v1896_v52 = vadd.s32 4294967295, %v2085_v44 }
 0x522   :  { %v1897_v26 = vadd.s32 4294967295, %v2087_v40 }
 0x523   :  { %vm1465_vm12 = vcmp.gt.s32.totalorder %v1896_v52, 0 }
 0x524   :  { %v1466_v58 = vsel %vm1465_vm12, %v1896_v52, 0  ;;  %vm1467_vm11 = vcmp.gt.s32.totalorder %v1897_v26, 0 }
 0x525   :  { %v1468_v8 = vsel %vm1467_vm11, %v1897_v26, 0  ;;  %vm1491_vm10 = vcmp.lt.s32.totalorder %v1466_v58, 14 }
 0x526   :  { %v1492_v28 = vsel %vm1491_vm10, %v1466_v58, 14  ;;  %vm1493_vm8 = vcmp.lt.s32.totalorder %v1468_v8, 14 }
 0x527   :  { %v1494_v3 = vsel %vm1493_vm8, %v1468_v8, 14  ;;  %vm1517_vm0 = vcmp.eq.s32.totalorder %v3054_v24, %v1492_v28  ;;  %v3368_v28 = vsel %vm917_vm15, 1.0, %v2251_v53 }
 0x528   :  { %vm1518_vm9 = vcmp.eq.s32.totalorder %v3054_v24, %v1494_v3  ;;  %v1282_v3 = vshll.u32 %v1281_v7, 16 }
 0x529   :  { %vm2041_vm6 = vmpackc.low %vm1518_vm9, %vm1517_vm0 }
 0x52a   :  { %2042 = vmatpush3.bf16.msk.msra.mxu0 %vm2041_vm6, %v2250_v14 }
 0x52b   :  { %2043 = vmatprep.subr.bf16.mxu0 %v2248_v56 }
 0x581   :  { %v1189_v20 = vpop.xlane.xlu0 %1188 }
 0x582   :  { %v1190_v50 = vcvt.f32.s32 %v1189_v20  ;;  %v1296_v20 = vcvt.f32.s32 %v3263_v4  ;;  %v1326_v4 = vcvt.f32.s32 %v3279_v11 }
 0x584   :  { %v1193_v62 = vadd.s32 %v1192_v46, %v1190_v50 }
 0x585   :  { %v1219_v25 = vpop.xlane.xlu0 %1218  ;;  %v1204_v30 = vpop.xlane.xlu1 %1203 }
 0x586   :  { %vm1374_vm13 = vcmp.eq.s32.totalorder %v1193_v62, %v981_v29  ;;  %v1220_v49 = vcvt.f32.s32 %v1219_v25  ;;  %v1205_v27 = vcvt.f32.s32 %v1204_v30  ;;  %v3385_v62 = vpop.eup %2219  ;;  %v1297_v30 = vshll.u32 %v1296_v20, 16 }
 0x587   :  { %v1883_v61 = vsel %vm1374_vm13, 1.0, %v2251_v53 }
 0x588   :  { %v1223_v21 = vadd.s32 %v1222_v38, %v1220_v49  ;;  %v1572_v43 = vmul.f32 %v1883_v61, %v3329_v36  ;;  %v1208_v41 = vadd.s32 %v1207_v10, %v1205_v27  ;;  %v1311_v49 = vcvt.f32.s32 %v3261_v45 }
 0x589   :  { %v1234_v57 = vpop.xlane.xlu1 %1233  ;;  %v1249_v55 = vpop.xlane.xlu0 %1248  ;;  %v1356_v61 = vcvt.f32.s32 %v3291_v23  ;;  %v990_v23 = vld [vmem:[%s3662_s2 + $0x48] sm:$0xff] }
 0x58a   :  { %1587 = vperm.xlu1 %2187, %v1572_v43   ;;  %vm1375_vm14 = vcmp.eq.s32.totalorder %v1208_v41, %v982_v33  ;;  %vm1376_vm6 = vcmp.eq.s32.totalorder %v1223_v21, %v983_v9  ;;  %v1235_v54 = vcvt.f32.s32 %v1234_v57  ;;  %v1250_v2 = vcvt.f32.s32 %v1249_v55 }
 0x58b   :  { %v1884_v5 = vsel %vm1375_vm14, 1.0, %v2251_v53  ;;  %v1885_v26 = vsel %vm1376_vm6, 1.0, %v2251_v53  ;;  %v1415_v43 = vmul.f32 15.0, %v3385_v62  ;;  %v1327_v33 = vshll.u32 %v1326_v4, 16 }
 0x58c   :  { %v1238_v47 = vadd.s32 %v1237_v18, %v1235_v54  ;;  %v1253_v51 = vadd.s32 %v1252_v0, %v1250_v2  ;;  %v1573_v44 = vmul.f32 %v1884_v5, %v3346_v12  ;;  %v1574_v37 = vmul.f32 %v1885_v26, %v3368_v28  ;;  %v3688_v26 = vld [vmem:[#allocation6_spill] sm:$0xff] }
 0x58d   :  { %v1264_v40 = vpop.xlane.xlu1 %1263  ;;  %v1279_v52 = vpop.xlane.xlu0 %1278  ;;  %v1312_v0 = vshll.u32 %v1311_v49, 16  ;;  %v1341_v18 = vcvt.f32.s32 %v3277_v15  ;;  %v3413_v55 = vsel %vm921_vm5, 1.0, %v2251_v53  ;;  %v3419_v2 = vsel %vm924_vm7, 1.0, %v2251_v53  ;;  %v991_v49 = vld [vmem:[%s3662_s2 + $0x50] sm:$0xff] }
 0x58e   :  { %vm1377_vm1 = vcmp.eq.s32.totalorder %v1238_v47, %v984_v13  ;;  %vm1378_vm0 = vcmp.eq.s32.totalorder %v1253_v51, %v985_v1  ;;  %v1265_v58 = vcvt.f32.s32 %v1264_v40  ;;  %v1280_v8 = vcvt.f32.s32 %v1279_v52  ;;  %1592 = vperm.xlu0 %2188, %v1573_v44  }
 0x58f   :  { %v1887_v6 = vsel %vm1378_vm0, 1.0, %v2251_v53  ;;  %v1886_v16 = vsel %vm1377_vm1, 1.0, %v2251_v53  ;;  %v1357_v13 = vshll.u32 %v1356_v61, 16  ;;  %v1428_v44 = vceil.f32 %v1415_v43  ;;  %v3692_v61 = vld [vmem:[#allocation7_spill] sm:$0xff] }
 0x590   :  { %v1268_v46 = vadd.s32 %v1267_v42, %v1265_v58  ;;  %v1576_v50 = vmul.f32 %v1887_v6, %v3361_v22  ;;  %v1283_v25 = vadd.s32 %v1282_v3, %v1280_v8  ;;  %v1575_v11 = vmul.f32 %v1886_v16, %v3381_v19  ;;  %v989_v42 = vld [vmem:[%s3662_s2 + $0x40] sm:$0xff]  ;;  %v992_v3 = vld [vmem:[%s3662_s2 + $0x58] sm:$0xff] }
 0x591   :  { %v1294_v59 = vpop.xlane.xlu1 %1293  ;;  %v1309_v29 = vpop.xlane.xlu0 %1308  ;;  %vm3689_vm5 = vcmp.lt.s32.totalorder %v3688_v26, %v2856_v17  ;;  %v1342_v8 = vshll.u32 %v1341_v18, 16  ;;  %v1371_v6 = vcvt.f32.s32 %v3289_v39  ;;  %vm3693_vm12 = vcmp.lt.s32.totalorder %v3692_v61, %v2856_v17 }
 0x592   :  { %vm1379_vm15 = vcmp.eq.s32.totalorder %v1268_v46, %v986_v48  ;;  %v1295_v38 = vcvt.f32.s32 %v1294_v59  ;;  %1597 = vperm.xlu0 %2188, %v1574_v37   ;;  %1607 = vperm.xlu1 %2187, %v1576_v50   ;;  %v1310_v10 = vcvt.f32.s32 %v1309_v29  ;;  %vm1380_vm2 = vcmp.eq.s32.totalorder %v1283_v25, %v987_v35  ;;  %v3690_v50 = vld [vmem:[#allocation10_spill] sm:$0xff] }
 0x593   :  { %v1888_v45 = vsel %vm1379_vm15, 1.0, %v2251_v53  ;;  %v1889_v51 = vsel %vm1380_vm2, 1.0, %v2251_v53  ;;  %v3431_v58 = vsel %vm3689_vm5, 1.0, %v2251_v53  ;;  %vm3691_vm7 = vcmp.lt.s32.totalorder %v3690_v50, %v2856_v17 }
 0x594   :  { %v1298_v9 = vadd.s32 %v1297_v30, %v1295_v38  ;;  %v1577_v7 = vmul.f32 %v1888_v45, %v3396_v32  ;;  %v1313_v1 = vadd.s32 %v1312_v0, %v1310_v10  ;;  %v1578_v37 = vmul.f32 %v1889_v51, %v3413_v55  ;;  %v3694_v0 = vld [vmem:[#allocation9_spill] sm:$0xff] }
 0x595   :  { %v1324_v27 = vpop.xlane.xlu1 %1323  ;;  %v1339_v21 = vpop.xlane.xlu0 %1338  ;;  %v3444_v59 = vsel %vm3691_vm7, 1.0, %v2251_v53  ;;  %v2088_v25 = vtrunc.f32 %v1428_v44  ;;  %v1372_v63 = vshll.u32 %v1371_v6, 16  ;;  %v3458_v10 = vsel %vm3693_vm12, 1.0, %v2251_v53 }
 0x596   :  { %v1325_v41 = vcvt.f32.s32 %v1324_v27  ;;  %1602 = vperm.xlu0 %2188, %v1575_v11   ;;  %vm1381_vm3 = vcmp.eq.s32.totalorder %v1298_v9, %v988_v34  ;;  %v1340_v40 = vcvt.f32.s32 %v1339_v21  ;;  %vm1382_vm8 = vcmp.eq.s32.totalorder %v1313_v1, %v989_v42  ;;  %v993_v9 = vld [vmem:[%s3662_s2 + $0x60] sm:$0xff]  ;;  %v3696_v1 = vld [vmem:[#allocation11_spill] sm:$0xff] }
 0x597   :  { %v1890_v4 = vsel %vm1381_vm3, 1.0, %v2251_v53  ;;  %v1891_v45 = vsel %vm1382_vm8, 1.0, %v2251_v53  ;;  %vm3695_vm10 = vcmp.lt.s32.totalorder %v3694_v0, %v2856_v17  ;;  %vm3697_vm14 = vcmp.lt.s32.totalorder %v3696_v1, %v2856_v17 }
 0x598   :  { %v1328_v15 = vadd.s32 %v1327_v33, %v1325_v41  ;;  %v1343_v38 = vadd.s32 %v1342_v8, %v1340_v40  ;;  %v1579_v11 = vmul.f32 %v1890_v4, %v3431_v58  ;;  %v2089_v33 = vcvt.f32.s32 %v2088_v25 }
 0x599   :  { %v1354_v5 = vpop.xlane.xlu1 %1353  ;;  %v1369_v47 = vpop.xlane.xlu0 %1368  ;;  %v1580_v41 = vmul.f32 %v1891_v45, %v3458_v10  ;;  %v3470_v18 = vsel %vm3695_vm10, 1.0, %v2251_v53 }
 0x59a   :  { %vm1383_vm4 = vcmp.eq.s32.totalorder %v1328_v15, %v990_v23  ;;  %v1355_v52 = vcvt.f32.s32 %v1354_v5  ;;  %1612 = vperm.xlu0 %2188, %v1577_v7   ;;  %v1370_v39 = vcvt.f32.s32 %v1369_v47  ;;  %vm1384_vm11 = vcmp.eq.s32.totalorder %v1343_v38, %v991_v49 }
 0x59b   :  { %v1892_v48 = vsel %vm1383_vm4, 1.0, %v2251_v53  ;;  %v1893_v57 = vsel %vm1384_vm11, 1.0, %v2251_v53  ;;  %v1898_v54 = vadd.s32 4294967295, %v2089_v33  ;;  %v3482_v5 = vsel %vm3697_vm14, 1.0, %v2251_v53 }
 0x59c   :  { %v1358_v20 = vadd.s32 %v1357_v13, %v1355_v52  ;;  %v1581_v46 = vmul.f32 %v1892_v48, %v3419_v2  ;;  %v1373_v43 = vadd.s32 %v1372_v63, %v1370_v39  ;;  %v1582_v7 = vmul.f32 %v1893_v57, %v3470_v18 }
 0x59d   :  { %v1100_v29 = vpop.xlane.xlu1 %1099  ;;  %v1097_v16 = vpop.xlane.xlu0 %1096  ;;  %vm1469_vm6 = vcmp.gt.s32.totalorder %v1898_v54, 0 }
 0x59e   :  { %vm1385_vm9 = vcmp.eq.s32.totalorder %v1358_v20, %v992_v3  ;;  %2221 = vrcp.f32 %v1100_v29  ;;  %1632 = vperm.xlu1 %2187, %v1581_v46   ;;  %1617 = vperm.xlu0 %2188, %v1578_v37   ;;  %vm1386_vm13 = vcmp.eq.s32.totalorder %v1373_v43, %v993_v9  ;;  %v1470_v20 = vsel %vm1469_vm6, %v1898_v54, 0 }
 0x59f   :  { %2223 = vrcp.f32 %v1097_v16  ;;  %v1894_v35 = vsel %vm1385_vm9, 1.0, %v2251_v53  ;;  %v1895_v44 = vsel %vm1386_vm13, 1.0, %v2251_v53  ;;  %vm1495_vm1 = vcmp.lt.s32.totalorder %v1470_v20, 14 }
 0x5a0   :  { %v1583_v30 = vmul.f32 %v1894_v35, %v3444_v59  ;;  %v1584_v8 = vmul.f32 %v1895_v44, %v3482_v5 }
 0x5a1   :  { %v1106_v27 = vpop.xlane.xlu1 %1105  ;;  %v1103_v21 = vpop.xlane.xlu0 %1102 }
 0x5a2   :  { %2225 = vrcp.f32 %v1106_v27  ;;  %1642 = vperm.xlu1 %2187, %v1583_v30   ;;  %1622 = vperm.xlu0 %2188, %v1579_v11  }
 0x5a3   :  { %2227 = vrcp.f32 %v1103_v21  ;;  %v1496_v21 = vsel %vm1495_vm1, %v1470_v20, 14 }
 0x5a4   :  { %vm1519_vm4 = vcmp.eq.s32.totalorder %v3054_v24, %v1496_v21 }
 0x5a5   :  { %v1112_v34 = vpop.xlane.xlu1 %1111  ;;  %v1109_v23 = vpop.xlane.xlu0 %1108 }
 0x5a6   :  { %2229 = vrcp.f32 %v1112_v34  ;;  %1627 = vperm.xlu0 %2188, %v1580_v41  }
 0x5a7   :  { %2231 = vrcp.f32 %v1109_v23 }
 0x5a8   :  { %v3473_v15 = vpop.eup %2221 }
 0x5a9   :  { %v3476_v13 = vpop.eup %2223  ;;  %v1121_v47 = vpop.xlane.xlu1 %1120  ;;  %v1417_v42 = vmul.f32 15.0, %v3473_v15 }
 0x5aa   :  { %v1115_v51 = vpop.xlane.xlu0 %1114  ;;  %1637 = vperm.xlu0 %2188, %v1582_v7   ;;  %v1416_v40 = vmul.f32 15.0, %v3476_v13 }
 0x5ab   :  { %2233 = vrcp.f32 %v1115_v51  ;;  %v1430_v52 = vceil.f32 %v1417_v42 }
 0x5ac   :  { %v3487_v26 = vpop.eup %2225  ;;  %v1429_v3 = vceil.f32 %v1416_v40  ;;  %2235 = vrcp.f32 %v1121_v47 }
 0x5ad   :  { %v3490_v17 = vpop.eup %2227  ;;  %v1124_v48 = vpop.xlane.xlu1 %1123  ;;  %v2092_v46 = vtrunc.f32 %v1430_v52  ;;  %v1419_v37 = vmul.f32 15.0, %v3487_v26 }
 0x5ae   :  { %v1118_v6 = vpop.xlane.xlu0 %1117  ;;  %1647 = vperm.xlu0 %2188, %v1584_v8   ;;  %v2090_v50 = vtrunc.f32 %v1429_v3  ;;  %v1418_v29 = vmul.f32 15.0, %v3490_v17 }
 0x5af   :  { %2237 = vrcp.f32 %v1118_v6  ;;  %v2093_v16 = vcvt.f32.s32 %v2092_v46  ;;  %v1432_v4 = vceil.f32 %v1419_v37 }
 0x5b0   :  { %v3494_v25 = vpop.eup %2229  ;;  %2239 = vrcp.f32 %v1124_v48  ;;  %v2091_v38 = vcvt.f32.s32 %v2090_v50  ;;  %v1431_v39 = vceil.f32 %v1418_v29 }
 0x5b1   :  { %v3496_v49 = vpop.eup %2231  ;;  %v1900_v35 = vadd.s32 4294967295, %v2093_v16  ;;  %v2096_v63 = vtrunc.f32 %v1432_v4  ;;  %v1421_v30 = vmul.f32 15.0, %v3494_v25 }
 0x5b2   :  { %v1899_v11 = vadd.s32 4294967295, %v2091_v38  ;;  %v2094_v61 = vtrunc.f32 %v1431_v39  ;;  %v1420_v27 = vmul.f32 15.0, %v3496_v49 }
 0x5b3   :  { %vm1473_vm0 = vcmp.gt.s32.totalorder %v1900_v35, 0  ;;  %v2097_v45 = vcvt.f32.s32 %v2096_v63  ;;  %v1434_v43 = vceil.f32 %v1421_v30 }
 0x5b4   :  { %vm1471_vm15 = vcmp.gt.s32.totalorder %v1899_v11, 0  ;;  %v2095_v33 = vcvt.f32.s32 %v2094_v61  ;;  %v1474_v9 = vsel %vm1473_vm0, %v1900_v35, 0  ;;  %v1433_v41 = vceil.f32 %v1420_v27 }
 0x5b5   :  { %v3500_v0 = vpop.eup %2233  ;;  %v1472_v34 = vsel %vm1471_vm15, %v1899_v11, 0  ;;  %vm1499_vm2 = vcmp.lt.s32.totalorder %v1474_v9, 14  ;;  %v1902_v23 = vadd.s32 4294967295, %v2097_v45  ;;  %v2100_v57 = vtrunc.f32 %v1434_v43 }
 0x5b6   :  { %vm1497_vm3 = vcmp.lt.s32.totalorder %v1472_v34, 14  ;;  %v1901_v54 = vadd.s32 4294967295, %v2095_v33  ;;  %v2098_v7 = vtrunc.f32 %v1433_v41  ;;  %v1500_v47 = vsel %vm1499_vm2, %v1474_v9, 14  ;;  %v3504_v44 = vpop.eup %2235 }
 0x5b7   :  { %v1498_v1 = vsel %vm1497_vm3, %v1472_v34, 14  ;;  %vm1477_vm5 = vcmp.gt.s32.totalorder %v1902_v23, 0  ;;  %v1422_v51 = vmul.f32 15.0, %v3500_v0  ;;  %v2101_v48 = vcvt.f32.s32 %v2100_v57 }
 0x5b8   :  { %vm1520_vm7 = vcmp.eq.s32.totalorder %v3054_v24, %v1498_v1  ;;  %vm1475_vm8 = vcmp.gt.s32.totalorder %v1901_v54, 0  ;;  %v2099_v42 = vcvt.f32.s32 %v2098_v7  ;;  %v1478_v40 = vsel %vm1477_vm5, %v1902_v23, 0 }
 0x5b9   :  { %v3507_v52 = vpop.eup %2237  ;;  %vm2044_vm9 = vmpackc.low %vm1520_vm7, %vm1519_vm4  ;;  %v1476_v8 = vsel %vm1475_vm8, %v1901_v54, 0  ;;  %vm1503_vm12 = vcmp.lt.s32.totalorder %v1478_v40, 14  ;;  %v1435_v3 = vceil.f32 %v1422_v51  ;;  %vm1521_vm10 = vcmp.eq.s32.totalorder %v3054_v24, %v1500_v47 }
 0x5ba   :  { %v3509_v6 = vpop.eup %2239  ;;  %2045 = vmatpush3.bf16.msk.msra.mxu0 %vm2044_vm9, %v2250_v14  ;;  %vm1501_vm11 = vcmp.lt.s32.totalorder %v1476_v8, 14  ;;  %v1903_v20 = vadd.s32 4294967295, %v2099_v42  ;;  %v1423_v46 = vmul.f32 15.0, %v3507_v52  ;;  %v1504_v50 = vsel %vm1503_vm12, %v1478_v40, 14 }
 0x5bb   :  { %2046 = vmatprep.subr.bf16.mxu0 %v2248_v56  ;;  %v1502_v37 = vsel %vm1501_vm11, %v1476_v8, 14  ;;  %v2102_v29 = vtrunc.f32 %v1435_v3  ;;  %v1904_v16 = vadd.s32 4294967295, %v2101_v48  ;;  %v1424_v4 = vmul.f32 15.0, %v3504_v44 }
 0x5bc   :  { %vm1522_vm13 = vcmp.eq.s32.totalorder %v3054_v24, %v1502_v37  ;;  %vm1479_vm14 = vcmp.gt.s32.totalorder %v1903_v20, 0  ;;  %v1436_v38 = vceil.f32 %v1423_v46  ;;  %v1425_v63 = vmul.f32 15.0, %v3509_v6 }
 0x5bd   :  { %vm2047_vm6 = vmpackc.low %vm1522_vm13, %vm1521_vm10  ;;  %v1480_v39 = vsel %vm1479_vm14, %v1903_v20, 0  ;;  %v2103_v35 = vcvt.f32.s32 %v2102_v29  ;;  %vm1481_vm1 = vcmp.gt.s32.totalorder %v1904_v16, 0  ;;  %v1437_v11 = vceil.f32 %v1424_v4 }
 0x5be   :  { %2048 = vmatpush3.bf16.msk.msra.mxu0 %vm2047_vm6, %v2250_v14  ;;  %vm1505_vm0 = vcmp.lt.s32.totalorder %v1480_v39, 14  ;;  %v1482_v30 = vsel %vm1481_vm1, %v1904_v16, 0  ;;  %v2104_v61 = vtrunc.f32 %v1436_v38  ;;  %v1438_v45 = vceil.f32 %v1425_v63 }
 0x5bf   :  { %2049 = vmatprep.subr.bf16.mxu0 %v2248_v56  ;;  %v1506_v27 = vsel %vm1505_vm0, %v1480_v39, 14  ;;  %v1905_v21 = vadd.s32 4294967295, %v2103_v35  ;;  %vm1507_vm15 = vcmp.lt.s32.totalorder %v1482_v30, 14  ;;  %vm1523_vm2 = vcmp.eq.s32.totalorder %v3054_v24, %v1504_v50 }
 0x5c0   :  { %vm1524_vm3 = vcmp.eq.s32.totalorder %v3054_v24, %v1506_v27  ;;  %v2105_v43 = vcvt.f32.s32 %v2104_v61  ;;  %v2106_v33 = vtrunc.f32 %v1437_v11  ;;  %v2108_v9 = vtrunc.f32 %v1438_v45 }
 0x5c1   :  { %vm2050_vm4 = vmpackc.low %vm1524_vm3, %vm1523_vm2  ;;  %vm1483_vm5 = vcmp.gt.s32.totalorder %v1905_v21, 0  ;;  %v1508_v34 = vsel %vm1507_vm15, %v1482_v30, 14  ;;  %vm2252_vm11 = vmmov 0   ;;  %v2253_v20 = vmov 1.0  }
 0x5c2   :  { %2051 = vmatpush3.bf16.msk.msra.mxu0 %vm2050_vm4, %v2250_v14  ;;  %v1484_v41 = vsel %vm1483_vm5, %v1905_v21, 0  ;;  %v2107_v23 = vcvt.f32.s32 %v2106_v33  ;;  %v1906_v57 = vadd.s32 4294967295, %v2105_v43  ;;  %v2109_v54 = vcvt.f32.s32 %v2108_v9  ;;  %2019 = vmatprep.mubr.msk.f32.mxu0 %vm2252_vm11, %v2251_v53 }
 0x5c3   :  { %2052 = vmatprep.subr.bf16.mxu0 %v2248_v56  ;;  %vm1509_vm7 = vcmp.lt.s32.totalorder %v1484_v41, 14  ;;  %vm1525_vm9 = vcmp.eq.s32.totalorder %v3054_v24, %v1508_v34  ;;  %vm1571_vm5 = vcmp.eq.s32.totalorder %v3054_v24, 2  ;;  %v1559_v50 = vmul.f32 %v3307_v31, %v3346_v12 }
 0x5c4   :  { %v1510_v7 = vsel %vm1509_vm7, %v1484_v41, 14  ;;  %v1907_v1 = vadd.s32 4294967295, %v2107_v23  ;;  %vm1485_vm8 = vcmp.gt.s32.totalorder %v1906_v57, 0  ;;  %v1908_v51 = vadd.s32 4294967295, %v2109_v54 }
 0x5c5   :  { %vm1526_vm12 = vcmp.eq.s32.totalorder %v3054_v24, %v1510_v7  ;;  %v1486_v47 = vsel %vm1485_vm8, %v1906_v57, 0  ;;  %vm1557_vm7 = vcmp.eq.s32.totalorder %v3054_v24, 1  ;;  %vm1556_vm8 = vcmp.eq.s32.totalorder %v3054_v24, 0 }
 0x5c6   :  { %vm2053_vm10 = vmpackc.low %vm1526_vm12, %vm1525_vm9  ;;  %vm1487_vm13 = vcmp.gt.s32.totalorder %v1907_v1, 0  ;;  %vm1511_vm14 = vcmp.lt.s32.totalorder %v1486_v47, 14  ;;  %vm1489_vm6 = vcmp.gt.s32.totalorder %v1908_v51, 0  ;;  %v1560_v38 = vmul.f32 %v3385_v62, %v3368_v28 }
 0x5c7   :  { %2054 = vmatpush3.bf16.msk.msra.mxu0 %vm2053_vm10, %v2250_v14  ;;  %v1488_v42 = vsel %vm1487_vm13, %v1907_v1, 0  ;;  %v1512_v40 = vsel %vm1511_vm14, %v1486_v47, 14  ;;  %v1490_v8 = vsel %vm1489_vm6, %v1908_v51, 0  ;;  %v1562_v61 = vmul.f32 %v3473_v15, %v3361_v22 }
 0x5c8   :  { %2055 = vmatprep.subr.bf16.mxu0 %v2248_v56  ;;  %vm1513_vm1 = vcmp.lt.s32.totalorder %v1488_v42, 14  ;;  %vm1527_vm0 = vcmp.eq.s32.totalorder %v3054_v24, %v1512_v40  ;;  %vm1515_vm15 = vcmp.lt.s32.totalorder %v1490_v8, 14  ;;  %v1558_v56 = vmul.f32 %v3305_v60, %v3329_v36 }
 0x5c9   :  { %v1514_v3 = vsel %vm1513_vm1, %v1488_v42, 14  ;;  %v1516_v48 = vsel %vm1515_vm15, %v1490_v8, 14  ;;  %v1563_v43 = vmul.f32 %v3490_v17, %v3396_v32  ;;  %v1564_v41 = vmul.f32 %v3487_v26, %v3413_v55 }
 0x5ca   :  { %vm1528_vm2 = vcmp.eq.s32.totalorder %v3054_v24, %v1514_v3  ;;  %vm1529_vm4 = vcmp.eq.s32.totalorder %v3054_v24, %v1516_v48  ;;  %v1565_v57 = vmul.f32 %v3496_v49, %v3431_v58  ;;  %v1566_v47 = vmul.f32 %v3494_v25, %v3458_v10 }
 0x5cb   :  { %vm2056_vm3 = vmpackc.low %vm1528_vm2, %vm1527_vm0  ;;  %v1567_v42 = vmul.f32 %v3500_v0, %v3419_v2  ;;  %v1568_v48 = vmul.f32 %v3507_v52, %v3470_v18  ;;  %vm1721_vm9 = vcmask 850944  }
 0x5cc   :  { %2057 = vmatpush3.bf16.msk.msra.mxu0 %vm2056_vm3, %v2250_v14 }
 0x5cd   :  { %2017 = vmatprep.subr.mxu0 %v2251_v53 }
 0x5d0   :  { %2018 = vmatpush3.msk.msra.mxu0 %vm1529_vm4, %v2253_v20 }
 0x609   :  { %v1588_v46 = vpop.permute.xlu1 %1587 }
 0x60a   :  { %v1650_v14 = vsel %vm1571_vm5, %v1588_v46, 0.0 }
 0x60b   :  { %v1663_v53 = vsel %vm1557_vm7, %v1558_v56, %v1650_v14  ;;  %v1569_v56 = vmul.f32 %v3504_v44, %v3444_v59 }
 0x60c   :  { %v1676_v37 = vsel %vm1556_vm8, %v3329_v36, %v1663_v53  ;;  %v1570_v53 = vmul.f32 %v3509_v6, %v3482_v5  ;;  %v980_v6 = vld [vmem:[%s3663_s3] sm:$0xff] }
 0x60d   :  { %1689 = vxpose.xlu1.b32.start [1/13] (short) (narrow) %v1676_v37, 8  ;;  %v1593_v29 = vpop.permute.xlu0 %1592 }
 0x60e   :  { %v1651_v60 = vsel %vm1571_vm5, %v1593_v29, 0.0 }
 0x60f   :  { %v1664_v16 = vsel %vm1557_vm7, %v1559_v50, %v1651_v60 }
 0x610   :  { %v1677_v4 = vsel %vm1556_vm8, %v3346_v12, %v1664_v16  ;;  %v1561_v12 = vmul.f32 %v3476_v13, %v3381_v19 }
 0x611   :  { %1690 = vxpose.xlu1.b32.cont [2/13] (short) (narrow) %v1677_v4, 8  ;;  %v1598_v36 = vpop.permute.xlu0 %1597  ;;  %v1608_v31 = vpop.permute.xlu1 %1607 }
 0x612   :  { %v1652_v39 = vsel %vm1571_vm5, %v1598_v36, 0.0  ;;  %v1654_v62 = vsel %vm1571_vm5, %v1608_v31, 0.0 }
 0x613   :  { %v1665_v35 = vsel %vm1557_vm7, %v1560_v38, %v1652_v39  ;;  %v1667_v13 = vsel %vm1557_vm7, %v1562_v61, %v1654_v62 }
 0x614   :  { %v1678_v63 = vsel %vm1556_vm8, %v3368_v28, %v1665_v35  ;;  %v1680_v15 = vsel %vm1556_vm8, %v3361_v22, %v1667_v13 }
 0x615   :  { %1691 = vxpose.xlu1.b32.cont [3/13] (short) (narrow) %v1678_v63, 8  ;;  %v1603_v30 = vpop.permute.xlu0 %1602 }
 0x616   :  { %v1653_v11 = vsel %vm1571_vm5, %v1603_v30, 0.0 }
 0x617   :  { %v1666_v27 = vsel %vm1557_vm7, %v1561_v12, %v1653_v11 }
 0x618   :  { %v1679_v28 = vsel %vm1556_vm8, %v3381_v19, %v1666_v27 }
 0x619   :  { %1692 = vxpose.xlu1.b32.cont [4/13] (short) (narrow) %v1679_v28, 8  ;;  %v1613_v21 = vpop.permute.xlu0 %1612 }
 0x61a   :  { %v1655_v45 = vsel %vm1571_vm5, %v1613_v21, 0.0 }
 0x61b   :  { %v1668_v33 = vsel %vm1557_vm7, %v1563_v43, %v1655_v45 }
 0x61c   :  { %v1681_v34 = vsel %vm1556_vm8, %v3396_v32, %v1668_v33 }
 0x61d   :  { %1693 = vxpose.xlu1.b32.cont [5/13] (short) (narrow) %v1680_v15, 8  ;;  %v1618_v19 = vpop.permute.xlu0 %1617  ;;  %v1633_v1 = vpop.permute.xlu1 %1632 }
 0x61e   :  { %v1656_v9 = vsel %vm1571_vm5, %v1618_v19, 0.0 }
 0x61f   :  { %v1669_v17 = vsel %vm1557_vm7, %v1564_v41, %v1656_v9 }
 0x620   :  { %v1682_v54 = vsel %vm1556_vm8, %v3413_v55, %v1669_v17  ;;  %v1659_v55 = vsel %vm1571_vm5, %v1633_v1, 0.0 }
 0x621   :  { %1694 = vxpose.xlu1.b32.cont [6/13] (short) (narrow) %v1681_v34, 8  ;;  %v1623_v22 = vpop.permute.xlu0 %1622  ;;  %v1672_v25 = vsel %vm1557_vm7, %v1567_v42, %v1659_v55  ;;  %v1643_v3 = vpop.permute.xlu1 %1642 }
 0x622   :  { %v1657_v23 = vsel %vm1571_vm5, %v1623_v22, 0.0  ;;  %v1685_v0 = vsel %vm1556_vm8, %v3419_v2, %v1672_v25 }
 0x623   :  { %v1670_v26 = vsel %vm1557_vm7, %v1565_v57, %v1657_v23 }
 0x624   :  { %v1683_v49 = vsel %vm1556_vm8, %v3431_v58, %v1670_v26 }
 0x625   :  { %1695 = vxpose.xlu1.b32.cont [7/13] (short) (narrow) %v1682_v54, 8  ;;  %v1628_v32 = vpop.permute.xlu0 %1627 }
 0x626   :  { %v1658_v7 = vsel %vm1571_vm5, %v1628_v32, 0.0 }
 0x627   :  { %v1671_v51 = vsel %vm1557_vm7, %v1566_v47, %v1658_v7 }
 0x628   :  { %v1684_v8 = vsel %vm1556_vm8, %v3458_v10, %v1671_v51  ;;  %v1661_v10 = vsel %vm1571_vm5, %v1643_v3, 0.0 }
 0x629   :  { %1696 = vxpose.xlu1.b32.cont [8/13] (short) (narrow) %v1683_v49, 8  ;;  %v1638_v40 = vpop.permute.xlu0 %1637  ;;  %v1674_v52 = vsel %vm1557_vm7, %v1569_v56, %v1661_v10 }
 0x62a   :  { %v1660_v58 = vsel %vm1571_vm5, %v1638_v40, 0.0  ;;  %v1687_v37 = vsel %vm1556_vm8, %v3444_v59, %v1674_v52 }
 0x62b   :  { %v1673_v20 = vsel %vm1557_vm7, %v1568_v48, %v1660_v58 }
 0x62c   :  { %v1686_v14 = vsel %vm1556_vm8, %v3470_v18, %v1673_v20 }
 0x62d   :  { %1697 = vxpose.xlu1.b32.cont [9/13] (short) (narrow) %v1684_v8, 8  ;;  %v1648_v46 = vpop.permute.xlu0 %1647 }
 0x62e   :  { %v1662_v2 = vsel %vm1571_vm5, %v1648_v46, 0.0 }
 0x62f   :  { %v1675_v44 = vsel %vm1557_vm7, %v1570_v53, %v1662_v2 }
 0x630   :  { %v1688_v18 = vsel %vm1556_vm8, %v3482_v5, %v1675_v44 }
 0x631   :  { %1698 = vxpose.xlu1.b32.cont [10/13] (short) (narrow) %v1685_v0, 8 }
 0x635   :  { %1699 = vxpose.xlu1.b32.cont [11/13] (short) (narrow) %v1686_v14, 8 }
 0x639   :  { %1700 = vxpose.xlu1.b32.cont [12/13] (short) (narrow) %v1687_v37, 8 }
 0x63d   :  { %1701 = vxpose.xlu1.b32.end [13/13] (short) (narrow) %v1688_v18, 8 }
 0x68d   :  { %v1705_v50 = vpop.trf.xlu1 }
 0x68e   :  { %2020 = vmatmul.mubr.msk.f32.vlgmr.msra.gmra.mrb[0].mxu0 %vm1721_vm9, %v1705_v50 }
 0x761   :  { %v1791_v29 = vpop.f32.mrb[0].mxu0 }
 0x762   :  { %v1795_v60 = vadd.f32 %v1791_v29, %v980_v6  ;;  %v2021_v16 = vpop.f32.mrb[1].mxu0 }
 0x764   :  { %1796 = vst [vmem:[%s3663_s3] sm:$0xff] %v1795_v60 }
 0x765 PF:  {}

</bundles_post_ra>
